<compile_context>
chip_gen: v7x
topology: tpu7x:2x2x1
jax: 0.10.0
libtpu: 0.0.40
codegen_flags: <defaults>
</compile_context>

<pallas_src>
import math
from functools import partial

import jax
import jax.numpy as jnp
from jax.experimental import pallas as pl
from jax.experimental.pallas import tpu as pltpu


# ----------------------------- helpers -----------------------------

def _pick_tile(dim, target):
    """Largest safe tile: full extent if small or not evenly divisible, else target."""
    if dim <= target:
        return dim
    if dim % target == 0:
        return target
    return dim  # fallback: full extent (keeps (8,128)/full-dim BlockSpec rule satisfied)


_VMEM_LIMIT = 32 * 1024 * 1024  # safe on v5e/v6e/v7x


# ----------------------------- tiled linear (x @ w + b, optional ReLU) -----------------------------

def _linear_kernel(x_ref, w_ref, b_ref, o_ref, acc_ref, *, activation):
    @pl.when(pl.program_id(2) == 0)
    def _():
        acc_ref[...] = jnp.zeros_like(acc_ref)

    acc_ref[...] += jnp.dot(x_ref[...], w_ref[...], preferred_element_type=jnp.float32)

    @pl.when(pl.program_id(2) == pl.num_programs(2) - 1)
    def _():
        y = acc_ref[...] + b_ref[...]
        if activation == "relu":
            y = jnp.maximum(y, 0.0)
        o_ref[...] = y.astype(o_ref.dtype)


def linear(x2d, w, b, activation=None, *, tm=256, tn=256, tk=512, out_dtype=jnp.float32):
    """x2d: [N, Din] @ w: [Din, Dout] + b -> [N, Dout], bf16 matmul / f32 accumulate."""
    n, din = x2d.shape
    dout = w.shape[1]
    btm, btn, btk = _pick_tile(n, tm), _pick_tile(dout, tn), _pick_tile(din, tk)
    grid = (n // btm, dout // btn, din // btk)
    return pl.pallas_call(
        partial(_linear_kernel, activation=activation),
        out_shape=jax.ShapeDtypeStruct((n, dout), out_dtype),
        grid=grid,
        in_specs=[
            pl.BlockSpec((btm, btk), lambda i, j, k: (i, k)),
            pl.BlockSpec((btk, btn), lambda i, j, k: (k, j)),
            pl.BlockSpec((1, btn), lambda i, j, k: (0, j)),
        ],
        out_specs=pl.BlockSpec((btm, btn), lambda i, j, k: (i, j)),
        scratch_shapes=[pltpu.VMEM((btm, btn), jnp.float32)],
        compiler_params=pltpu.CompilerParams(
            dimension_semantics=("parallel", "parallel", "arbitrary"),
            vmem_limit_bytes=_VMEM_LIMIT),
    )(x2d.astype(jnp.bfloat16), w.astype(jnp.bfloat16), b.reshape(1, dout))


# ----------------------------- multi-head attention core -----------------------------

def _attn_kernel(q_ref, k_ref, v_ref, bias_ref, o_ref, *, n_head, scale):
    # per-batch tile: q [Tq, D], k/v [Tk, D], additive bias [Tq, Tk] (0 or -1e9)
    q = q_ref[0]
    k = k_ref[0]
    v = v_ref[0]
    bias = bias_ref[...]
    dk = q.shape[-1] // n_head
    outs = []
    for h in range(n_head):  # static unroll; per-head lane slices of the D axis
        qh = q[:, h * dk:(h + 1) * dk]
        kh = k[:, h * dk:(h + 1) * dk]
        vh = v[:, h * dk:(h + 1) * dk]
        s = jax.lax.dot_general(qh, kh, (((1,), (1,)), ((), ())),
                                preferred_element_type=jnp.float32)
        s = s * scale + bias                              # masked_fill as additive bias
        m = jnp.max(s, axis=-1, keepdims=True)            # stable softmax
        p = jnp.exp(s - m)
        denom = jnp.sum(p, axis=-1, keepdims=True)
        p = p * pl.reciprocal(denom, approx=True)
        outs.append(jnp.dot(p.astype(vh.dtype), vh, preferred_element_type=jnp.float32))
    o_ref[0] = jnp.concatenate(outs, axis=-1).astype(o_ref.dtype)  # lane-dense [Tq, D] store


def attention(q, k, v, bias, *, n_head):
    """q: [B, Tq, D] (bf16), k/v: [B, Tk, D] (bf16), bias: [Tq, Tk] -> [B, Tq, D] (bf16)."""
    B, Tq, D = q.shape
    Tk = k.shape[1]
    dk = D // n_head
    scale = 1.0 / math.sqrt(dk)
    return pl.pallas_call(
        partial(_attn_kernel, n_head=n_head, scale=scale),
        out_shape=jax.ShapeDtypeStruct((B, Tq, D), jnp.bfloat16),
        grid=(B,),
        in_specs=[
            pl.BlockSpec((1, Tq, D), lambda b: (b, 0, 0)),
            pl.BlockSpec((1, Tk, D), lambda b: (b, 0, 0)),
            pl.BlockSpec((1, Tk, D), lambda b: (b, 0, 0)),
            pl.BlockSpec((Tq, Tk), lambda b: (0, 0)),
        ],
        out_specs=pl.BlockSpec((1, Tq, D), lambda b: (b, 0, 0)),
        compiler_params=pltpu.CompilerParams(
            dimension_semantics=("parallel",),
            vmem_limit_bytes=_VMEM_LIMIT),
    )(q, k, v, bias)


# ----------------------------- fused output-projection + residual + LayerNorm -----------------------------

def _proj_add_ln_kernel(a_ref, w_ref, b_ref, res_ref, g_ref, be_ref, o_ref, *, eps):
    y = jnp.dot(a_ref[...], w_ref[...], preferred_element_type=jnp.float32) + b_ref[...]
    y = y + res_ref[...]
    mu = jnp.mean(y, axis=-1, keepdims=True)
    var = jnp.mean((y - mu) ** 2, axis=-1, keepdims=True)
    yn = (y - mu) * jax.lax.rsqrt(var + eps)
    o_ref[...] = (yn * g_ref[...] + be_ref[...]).astype(o_ref.dtype)


def proj_add_layernorm(a2d, w, b, res2d, gamma, beta, *, eps=1e-5, tm=256):
    """LayerNorm(residual + (a2d @ w + b)); a2d: [N, Din] (bf16), res2d: [N, D] (f32)."""
    n, din = a2d.shape
    d = w.shape[1]
    btm = _pick_tile(n, tm)
    return pl.pallas_call(
        partial(_proj_add_ln_kernel, eps=eps),
        out_shape=jax.ShapeDtypeStruct((n, d), jnp.float32),
        grid=(n // btm,),
        in_specs=[
            pl.BlockSpec((btm, din), lambda i: (i, 0)),
            pl.BlockSpec((din, d), lambda i: (0, 0)),
            pl.BlockSpec((1, d), lambda i: (0, 0)),
            pl.BlockSpec((btm, d), lambda i: (i, 0)),
            pl.BlockSpec((1, d), lambda i: (0, 0)),
            pl.BlockSpec((1, d), lambda i: (0, 0)),
        ],
        out_specs=pl.BlockSpec((btm, d), lambda i: (i, 0)),
        compiler_params=pltpu.CompilerParams(
            dimension_semantics=("parallel",),
            vmem_limit_bytes=_VMEM_LIMIT),
    )(a2d.astype(jnp.bfloat16), w.astype(jnp.bfloat16), b.reshape(1, d),
      res2d, gamma.reshape(1, d), beta.reshape(1, d))


# ----------------------------- fused FFN + residual + LayerNorm -----------------------------

def _ffn_add_ln_kernel(x_ref, w1_ref, b1_ref, w2_ref, b2_ref, res_ref, g_ref, be_ref,
                       o_ref, *, eps):
    h = jnp.dot(x_ref[...], w1_ref[...], preferred_element_type=jnp.float32) + b1_ref[...]
    h = jnp.maximum(h, 0.0)
    y = jnp.dot(h.astype(jnp.bfloat16), w2_ref[...],
                preferred_element_type=jnp.float32) + b2_ref[...]
    y = y + res_ref[...]
    mu = jnp.mean(y, axis=-1, keepdims=True)
    var = jnp.mean((y - mu) ** 2, axis=-1, keepdims=True)
    yn = (y - mu) * jax.lax.rsqrt(var + eps)
    o_ref[...] = (yn * g_ref[...] + be_ref[...]).astype(o_ref.dtype)


def ffn_add_layernorm(x2d, w1, b1, w2, b2, gamma, beta, *, eps=1e-5, tm=256):
    """LayerNorm(x + relu(x@w1+b1)@w2+b2); the [tm, d_ff] intermediate stays in VMEM."""
    n, d = x2d.shape
    f = w1.shape[1]
    btm = _pick_tile(n, tm)
    return pl.pallas_call(
        partial(_ffn_add_ln_kernel, eps=eps),
        out_shape=jax.ShapeDtypeStruct((n, d), jnp.float32),
        grid=(n // btm,),
        in_specs=[
            pl.BlockSpec((btm, d), lambda i: (i, 0)),
            pl.BlockSpec((d, f), lambda i: (0, 0)),
            pl.BlockSpec((1, f), lambda i: (0, 0)),
            pl.BlockSpec((f, d), lambda i: (0, 0)),
            pl.BlockSpec((1, d), lambda i: (0, 0)),
            pl.BlockSpec((btm, d), lambda i: (i, 0)),
            pl.BlockSpec((1, d), lambda i: (0, 0)),
            pl.BlockSpec((1, d), lambda i: (0, 0)),
        ],
        out_specs=pl.BlockSpec((btm, d), lambda i: (i, 0)),
        compiler_params=pltpu.CompilerParams(
            dimension_semantics=("parallel",),
            vmem_limit_bytes=_VMEM_LIMIT),
    )(x2d.astype(jnp.bfloat16), w1.astype(jnp.bfloat16), b1.reshape(1, f),
      w2.astype(jnp.bfloat16), b2.reshape(1, d), x2d,
      gamma.reshape(1, d), beta.reshape(1, d))


# ----------------------------- model (glue in plain JAX) -----------------------------

def decoder_layer(x, enc_out, src_bias, tgt_bias, p, n_head):
    B, T, D = x.shape
    Ts = enc_out.shape[1]
    x2d = x.reshape(B * T, D)                      # f32 residual

    # --- self attention: fused QKV projection -> attention -> fused (Wo + add + LN) ---
    qkv = linear(x2d, p["sa_w_qkv"], p["sa_b_qkv"], out_dtype=jnp.bfloat16)   # [N, 3D]
    q = qkv[:, :D].reshape(B, T, D)
    k = qkv[:, D:2 * D].reshape(B, T, D)
    v = qkv[:, 2 * D:].reshape(B, T, D)
    sa = attention(q, k, v, tgt_bias, n_head=n_head).reshape(B * T, D)        # bf16
    x2d = proj_add_layernorm(sa, p["sa_wo"], p["sa_bo"], x2d, p["g1"], p["b1"])

    # --- encoder attention: Q from x, fused KV from enc_out ---
    q = linear(x2d, p["ea_wq"], p["ea_bq"], out_dtype=jnp.bfloat16).reshape(B, T, D)
    kv = linear(enc_out.reshape(B * Ts, D), p["ea_w_kv"], p["ea_b_kv"],
                out_dtype=jnp.bfloat16)                                       # [B*Ts, 2D]
    k = kv[:, :D].reshape(B, Ts, D)
    v = kv[:, D:].reshape(B, Ts, D)
    ea = attention(q, k, v, src_bias, n_head=n_head).reshape(B * T, D)
    x2d = proj_add_layernorm(ea, p["ea_wo"], p["ea_bo"], x2d, p["g2"], p["b2"])

    # --- feed-forward + add + LN (fully fused) ---
    x2d = ffn_add_layernorm(x2d, p["w1"], p["bf1"], p["w2"], p["bf2"], p["g3"], p["b3"])
    return x2d.reshape(B, T, D)


def decoder_forward(params, tok_ids, enc_out, src_mask, tgt_mask, n_head):
    B, T = tok_ids.shape
    V, D = params["emb"].shape
    # glue: embedding gather + sqrt(d_model) scale + positional encoding (dropout = identity)
    x = jnp.take(params["emb"], tok_ids, axis=0) * math.sqrt(D)
    x = x + params["pe"][:T][None, :, :]
    # masked_fill(mask==0, -1e9) expressed as an additive bias
    tgt_bias = (tgt_mask.astype(jnp.float32) - 1.0) * 1e9
    src_bias = (src_mask.astype(jnp.float32) - 1.0) * 1e9
    for lp in params["layers"]:
        x = decoder_layer(x, enc_out, src_bias, tgt_bias, lp, n_head)
    logits = linear(x.reshape(B * T, D), params["fc_w"], params["fc_b"])   # vocab-tiled
    return logits.reshape(B, T, V)


# ----------------------------- deterministic parameter init -----------------------------

def _init_linear(key, din, dout, wdtype=jnp.bfloat16):
    k1, k2 = jax.random.split(key)
    bound = 1.0 / math.sqrt(din)
    w = jax.random.uniform(k1, (din, dout), jnp.float32, -bound, bound).astype(wdtype)
    b = jax.random.uniform(k2, (dout,), jnp.float32, -bound, bound)
    return w, b


def _init_layer(key, d_model, d_ff):
    ks = jax.random.split(key, 7)
    p = {}
    p["sa_w_qkv"], p["sa_b_qkv"] = _init_linear(ks[0], d_model, 3 * d_model)
    p["sa_wo"], p["sa_bo"] = _init_linear(ks[1], d_model, d_model)
    p["ea_wq"], p["ea_bq"] = _init_linear(ks[2], d_model, d_model)
    p["ea_w_kv"], p["ea_b_kv"] = _init_linear(ks[3], d_model, 2 * d_model)
    p["ea_wo"], p["ea_bo"] = _init_linear(ks[4], d_model, d_model)
    p["w1"], p["bf1"] = _init_linear(ks[5], d_model, d_ff)
    p["w2"], p["bf2"] = _init_linear(ks[6], d_ff, d_model)
    for i in (1, 2, 3):
        p[f"g{i}"] = jnp.ones((d_model,), jnp.float32)
        p[f"b{i}"] = jnp.zeros((d_model,), jnp.float32)
    return p


def _positional_encoding(max_seq_len, d_model):
    position = jnp.arange(max_seq_len, dtype=jnp.float32)[:, None]
    div_term = jnp.exp(jnp.arange(0, d_model, 2, dtype=jnp.float32)
                       * (-math.log(10000.0) / d_model))
    pe = jnp.zeros((max_seq_len, d_model), jnp.float32)
    pe = pe.at[:, 0::2].set(jnp.sin(position * div_term))
    pe = pe.at[:, 1::2].set(jnp.cos(position * div_term))
    return pe


def init_decoder_params(key, vocab_size, d_model, n_layers, d_ff, max_seq_len):
    ks = jax.random.split(key, n_layers + 2)
    params = {
        "emb": jax.random.normal(ks[0], (vocab_size, d_model), jnp.float32),
        "pe": _positional_encoding(max_seq_len, d_model),
        "layers": [_init_layer(ks[1 + i], d_model, d_ff) for i in range(n_layers)],
    }
    params["fc_w"], params["fc_b"] = _init_linear(ks[-1], d_model, vocab_size)
    return params


# ----------------------------- driver -----------------------------

if __name__ == "__main__":
    vocab_size, d_model, n_head, n_layers, d_ff, max_seq_len = 64, 32, 4, 2, 64, 16
    B, T_tgt, T_src = 2, 8, 8

    root = jax.random.PRNGKey(0)
    k_params, k_tok, k_enc = jax.random.split(root, 3)

    params = init_decoder_params(k_params, vocab_size, d_model, n_layers, d_ff, max_seq_len)

    tok_ids = jax.random.randint(k_tok, (B, T_tgt), 0, vocab_size, dtype=jnp.int32)
    enc_output = jax.random.normal(k_enc, (B, T_src, d_model), jnp.float32)
    # masks broadcast over batch/heads (equivalent to PyTorch [1,1,Tq,Tk] masks)
    # TODO(synk): per-batch padding masks would need a batch dim on the mask BlockSpec.
    tgt_mask = jnp.tril(jnp.ones((T_tgt, T_tgt), jnp.float32))   # causal
    src_mask = jnp.ones((T_tgt, T_src), jnp.float32)             # attend everywhere

    fwd = jax.jit(partial(decoder_forward, n_head=n_head))
    logits = fwd(params, tok_ids, enc_output, src_mask, tgt_mask)
    jax.block_until_ready(logits)

    assert logits.shape == (B, T_tgt, vocab_size)
    assert bool(jnp.all(jnp.isfinite(logits)))
    print("KERNEL_OK")
</pallas_src>

<mosaic_0001>
module attributes {stable_mosaic.version = 11 : i64} {
  func.func @_linear_kernel(%arg0: i32, %arg1: i32, %arg2: i32, %arg3: memref<16x32xbf16, #tpu.memory_space<vmem>>, %arg4: memref<32x96xbf16, #tpu.memory_space<vmem>>, %arg5: memref<1x96xf32, #tpu.memory_space<vmem>>, %arg6: memref<16x96xbf16, #tpu.memory_space<vmem>>, %arg7: memref<16x96xf32, #tpu.memory_space<vmem>>) attributes {dimension_semantics = [#tpu.dimension_semantics<parallel>, #tpu.dimension_semantics<parallel>, #tpu.dimension_semantics<arbitrary>], iteration_bounds = array<i64: 1, 1, 1>, scalar_prefetch = 0 : i64, scratch_operands = 1 : i64, tpu.core_type = #tpu.core_type<tc>, window_params = [{transform_indices = @transform_0, window_bounds = array<i64: 16, 32>}, {transform_indices = @transform_1, window_bounds = array<i64: 32, 96>}, {transform_indices = @transform_2, window_bounds = array<i64: 1, 96>}, {transform_indices = @transform_3, window_bounds = array<i64: 16, 96>}]} {
    %c0_i32 = arith.constant 0 : i32
    %0 = arith.cmpi eq, %arg2, %c0_i32 : i32
    %1 = arith.extui %0 : i1 to i32
    %c0_i32_0 = arith.constant 0 : i32
    %2 = arith.cmpi ne, %1, %c0_i32_0 : i32
    scf.if %2 {
      %cst_10 = arith.constant 0.000000e+00 : f32
      %12 = vector.broadcast %cst_10 : f32 to vector<16x96xf32>
      %c0_11 = arith.constant 0 : index
      %c0_12 = arith.constant 0 : index
      %13 = vector.load %arg7[%c0_11, %c0_12] : memref<16x96xf32, #tpu.memory_space<vmem>>, vector<16x96xf32>
      tpu.vector_store %arg7[%c0_11, %c0_12], %12 {strides = array<i32>} : memref<16x96xf32, #tpu.memory_space<vmem>>, vector<16x96xf32>,
    } else {
    }
    %c0 = arith.constant 0 : index
    %c0_1 = arith.constant 0 : index
    %3 = vector.load %arg7[%c0, %c0_1] : memref<16x96xf32, #tpu.memory_space<vmem>>, vector<16x96xf32>
    %c0_2 = arith.constant 0 : index
    %c0_3 = arith.constant 0 : index
    %4 = vector.load %arg3[%c0_2, %c0_3] : memref<16x32xbf16, #tpu.memory_space<vmem>>, vector<16x32xbf16>
    %c0_4 = arith.constant 0 : index
    %c0_5 = arith.constant 0 : index
    %5 = vector.load %arg4[%c0_4, %c0_5] : memref<32x96xbf16, #tpu.memory_space<vmem>>, vector<32x96xbf16>
    %cst = arith.constant dense<0.000000e+00> : vector<16x96xf32>
    %6 = tpu.matmul %4, %5, %cst {dimension_numbers = #tpu.dot_dimension_numbers<[1], [0], [0], [1], [0, 0, 1, 1], [], []>} : vector<16x32xbf16>, vector<32x96xbf16>, vector<16x96xf32> -> vector<16x96xf32>
    %7 = arith.addf %3, %6 : vector<16x96xf32>
    %c0_6 = arith.constant 0 : index
    %c0_7 = arith.constant 0 : index
    %8 = vector.load %arg7[%c0_6, %c0_7] : memref<16x96xf32, #tpu.memory_space<vmem>>, vector<16x96xf32>
    tpu.vector_store %arg7[%c0_6, %c0_7], %7 {strides = array<i32>} : memref<16x96xf32, #tpu.memory_space<vmem>>, vector<16x96xf32>,
    %c0_i32_8 = arith.constant 0 : i32
    %9 = arith.cmpi eq, %arg2, %c0_i32_8 : i32
    %10 = arith.extui %9 : i1 to i32
    %c0_i32_9 = arith.constant 0 : i32
    %11 = arith.cmpi ne, %10, %c0_i32_9 : i32
    scf.if %11 {
      %c0_10 = arith.constant 0 : index
      %c0_11 = arith.constant 0 : index
      %12 = vector.load %arg7[%c0_10, %c0_11] : memref<16x96xf32, #tpu.memory_space<vmem>>, vector<16x96xf32>
      %c0_12 = arith.constant 0 : index
      %c0_13 = arith.constant 0 : index
      %13 = vector.load %arg5[%c0_12, %c0_13] : memref<1x96xf32, #tpu.memory_space<vmem>>, vector<1x96xf32>
      %14 = vector.broadcast %13 : vector<1x96xf32> to vector<16x96xf32>
      %15 = arith.addf %12, %14 : vector<16x96xf32>
      %16 = arith.truncf %15 : vector<16x96xf32> to vector<16x96xbf16>
      %c0_14 = arith.constant 0 : index
      %c0_15 = arith.constant 0 : index
      %17 = vector.load %arg6[%c0_14, %c0_15] : memref<16x96xbf16, #tpu.memory_space<vmem>>, vector<16x96xbf16>
      tpu.vector_store %arg6[%c0_14, %c0_15], %16 {strides = array<i32>} : memref<16x96xbf16, #tpu.memory_space<vmem>>, vector<16x96xbf16>,
    } else {
    }
    return
  }
  func.func @transform_0(%arg0: i32, %arg1: i32, %arg2: i32) -> (i32, i32) {
    %c0_i32 = arith.constant 0 : i32
    return %arg0, %arg2 : i32, i32
  }
  func.func @transform_1(%arg0: i32, %arg1: i32, %arg2: i32) -> (i32, i32) {
    %c0_i32 = arith.constant 0 : i32
    return %arg2, %arg1 : i32, i32
  }
  func.func @transform_2(%arg0: i32, %arg1: i32, %arg2: i32) -> (i32, i32) {
    %c0_i32 = arith.constant 0 : i32
    %c0_i32_0 = arith.constant 0 : i32
    return %c0_i32, %arg1 : i32, i32
  }
  func.func @transform_3(%arg0: i32, %arg1: i32, %arg2: i32) -> (i32, i32) {
    %c0_i32 = arith.constant 0 : i32
    return %arg0, %arg1 : i32, i32
  }
}

module attributes {stable_mosaic.version = 11 : i64} {
  func.func @_attn_kernel(%arg0: i32, %arg1: memref<1x8x32xbf16, #tpu.memory_space<vmem>>, %arg2: memref<1x8x32xbf16, #tpu.memory_space<vmem>>, %arg3: memref<1x8x32xbf16, #tpu.memory_space<vmem>>, %arg4: memref<8x8xf32, #tpu.memory_space<vmem>>, %arg5: memref<1x8x32xbf16, #tpu.memory_space<vmem>>) attributes {dimension_semantics = [#tpu.dimension_semantics<parallel>], iteration_bounds = array<i64: 2>, scalar_prefetch = 0 : i64, scratch_operands = 0 : i64, tpu.core_type = #tpu.core_type<tc>, window_params = [{transform_indices = @transform_0, window_bounds = array<i64: 1, 8, 32>}, {transform_indices = @transform_1, window_bounds = array<i64: 1, 8, 32>}, {transform_indices = @transform_2, window_bounds = array<i64: 1, 8, 32>}, {pipeline_mode = #tpu.pipeline_mode<synchronous>, transform_indices = @transform_3, window_bounds = array<i64: 8, 8>}, {transform_indices = @transform_4, window_bounds = array<i64: 1, 8, 32>}]} {
    %c0 = arith.constant 0 : index
    %c0_0 = arith.constant 0 : index
    %c0_1 = arith.constant 0 : index
    %0 = vector.load %arg1[%c0, %c0_0, %c0_1] : memref<1x8x32xbf16, #tpu.memory_space<vmem>>, vector<1x8x32xbf16>
    %1 = vector.shape_cast %0 : vector<1x8x32xbf16> to vector<8x32xbf16>
    %c0_2 = arith.constant 0 : index
    %c0_3 = arith.constant 0 : index
    %c0_4 = arith.constant 0 : index
    %2 = vector.load %arg2[%c0_2, %c0_3, %c0_4] : memref<1x8x32xbf16, #tpu.memory_space<vmem>>, vector<1x8x32xbf16>
    %3 = vector.shape_cast %2 : vector<1x8x32xbf16> to vector<8x32xbf16>
    %c0_5 = arith.constant 0 : index
    %c0_6 = arith.constant 0 : index
    %c0_7 = arith.constant 0 : index
    %4 = vector.load %arg3[%c0_5, %c0_6, %c0_7] : memref<1x8x32xbf16, #tpu.memory_space<vmem>>, vector<1x8x32xbf16>
    %5 = vector.shape_cast %4 : vector<1x8x32xbf16> to vector<8x32xbf16>
    %c0_8 = arith.constant 0 : index
    %c0_9 = arith.constant 0 : index
    %6 = vector.load %arg4[%c0_8, %c0_9] : memref<8x8xf32, #tpu.memory_space<vmem>>, vector<8x8xf32>
    %7 = vector.extract_strided_slice %1 {offsets = [0, 0], sizes = [8, 8], strides = [1, 1]} : vector<8x32xbf16> to vector<8x8xbf16>
    %8 = vector.extract_strided_slice %3 {offsets = [0, 0], sizes = [8, 8], strides = [1, 1]} : vector<8x32xbf16> to vector<8x8xbf16>
    %9 = vector.extract_strided_slice %5 {offsets = [0, 0], sizes = [8, 8], strides = [1, 1]} : vector<8x32xbf16> to vector<8x8xbf16>
    %cst = arith.constant dense<0.000000e+00> : vector<8x8xf32>
    %10 = tpu.matmul %7, %8, %cst {dimension_numbers = #tpu.dot_dimension_numbers<[1], [1], [0], [0], [0, 0, 1, 0], [], []>} : vector<8x8xbf16>, vector<8x8xbf16>, vector<8x8xf32> -> vector<8x8xf32>
    %cst_10 = arith.constant 0.353553385 : f32
    %11 = vector.broadcast %cst_10 : f32 to vector<8x8xf32>
    %12 = arith.mulf %10, %11 : vector<8x8xf32>
    %13 = arith.addf %12, %6 : vector<8x8xf32>
    %cst_11 = arith.constant dense<0xFF800000> : vector<8xf32>
    %14 = vector.multi_reduction <maximumf>, %13, %cst_11 [1] : vector<8x8xf32> to vector<8xf32>
    %15 = vector.shape_cast %14 : vector<8xf32> to vector<8x1xf32>
    %16 = vector.broadcast %15 : vector<8x1xf32> to vector<8x8xf32>
    %17 = arith.subf %13, %16 : vector<8x8xf32>
    %18 = math.exp %17 : vector<8x8xf32>
    %cst_12 = arith.constant dense<0.000000e+00> : vector<8xf32>
    %19 = vector.multi_reduction <add>, %18, %cst_12 [1] : vector<8x8xf32> to vector<8xf32>
    %20 = vector.shape_cast %19 : vector<8xf32> to vector<8x1xf32>
    %21 = tpu.reciprocal %20 {approx = true} : vector<8x1xf32> -> vector<8x1xf32>
    %22 = vector.broadcast %21 : vector<8x1xf32> to vector<8x8xf32>
    %23 = arith.mulf %18, %22 : vector<8x8xf32>
    %24 = arith.truncf %23 : vector<8x8xf32> to vector<8x8xbf16>
    %cst_13 = arith.constant dense<0.000000e+00> : vector<8x8xf32>
    %25 = tpu.matmul %24, %9, %cst_13 {dimension_numbers = #tpu.dot_dimension_numbers<[1], [0], [0], [1], [0, 0, 1, 1], [], []>} : vector<8x8xbf16>, vector<8x8xbf16>, vector<8x8xf32> -> vector<8x8xf32>
    %26 = vector.extract_strided_slice %1 {offsets = [0, 8], sizes = [8, 8], strides = [1, 1]} : vector<8x32xbf16> to vector<8x8xbf16>
    %27 = vector.extract_strided_slice %3 {offsets = [0, 8], sizes = [8, 8], strides = [1, 1]} : vector<8x32xbf16> to vector<8x8xbf16>
    %28 = vector.extract_strided_slice %5 {offsets = [0, 8], sizes = [8, 8], strides = [1, 1]} : vector<8x32xbf16> to vector<8x8xbf16>
    %cst_14 = arith.constant dense<0.000000e+00> : vector<8x8xf32>
    %29 = tpu.matmul %26, %27, %cst_14 {dimension_numbers = #tpu.dot_dimension_numbers<[1], [1], [0], [0], [0, 0, 1, 0], [], []>} : vector<8x8xbf16>, vector<8x8xbf16>, vector<8x8xf32> -> vector<8x8xf32>
    %cst_15 = arith.constant 0.353553385 : f32
    %30 = vector.broadcast %cst_15 : f32 to vector<8x8xf32>
    %31 = arith.mulf %29, %30 : vector<8x8xf32>
    %32 = arith.addf %31, %6 : vector<8x8xf32>
    %cst_16 = arith.constant dense<0xFF800000> : vector<8xf32>
    %33 = vector.multi_reduction <maximumf>, %32, %cst_16 [1] : vector<8x8xf32> to vector<8xf32>
    %34 = vector.shape_cast %33 : vector<8xf32> to vector<8x1xf32>
    %35 = vector.broadcast %34 : vector<8x1xf32> to vector<8x8xf32>
    %36 = arith.subf %32, %35 : vector<8x8xf32>
    %37 = math.exp %36 : vector<8x8xf32>
    %cst_17 = arith.constant dense<0.000000e+00> : vector<8xf32>
    %38 = vector.multi_reduction <add>, %37, %cst_17 [1] : vector<8x8xf32> to vector<8xf32>
    %39 = vector.shape_cast %38 : vector<8xf32> to vector<8x1xf32>
    %40 = tpu.reciprocal %39 {approx = true} : vector<8x1xf32> -> vector<8x1xf32>
    %41 = vector.broadcast %40 : vector<8x1xf32> to vector<8x8xf32>
    %42 = arith.mulf %37, %41 : vector<8x8xf32>
    %43 = arith.truncf %42 : vector<8x8xf32> to vector<8x8xbf16>
    %cst_18 = arith.constant dense<0.000000e+00> : vector<8x8xf32>
    %44 = tpu.matmul %43, %28, %cst_18 {dimension_numbers = #tpu.dot_dimension_numbers<[1], [0], [0], [1], [0, 0, 1, 1], [], []>} : vector<8x8xbf16>, vector<8x8xbf16>, vector<8x8xf32> -> vector<8x8xf32>
    %45 = vector.extract_strided_slice %1 {offsets = [0, 16], sizes = [8, 8], strides = [1, 1]} : vector<8x32xbf16> to vector<8x8xbf16>
    %46 = vector.extract_strided_slice %3 {offsets = [0, 16], sizes = [8, 8], strides = [1, 1]} : vector<8x32xbf16> to vector<8x8xbf16>
    %47 = vector.extract_strided_slice %5 {offsets = [0, 16], sizes = [8, 8], strides = [1, 1]} : vector<8x32xbf16> to vector<8x8xbf16>
    %cst_19 = arith.constant dense<0.000000e+00> : vector<8x8xf32>
    %48 = tpu.matmul %45, %46, %cst_19 {dimension_numbers = #tpu.dot_dimension_numbers<[1], [1], [0], [0], [0, 0, 1, 0], [], []>} : vector<8x8xbf16>, vector<8x8xbf16>, vector<8x8xf32> -> vector<8x8xf32>
    %cst_20 = arith.constant 0.353553385 : f32
    %49 = vector.broadcast %cst_20 : f32 to vector<8x8xf32>
    %50 = arith.mulf %48, %49 : vector<8x8xf32>
    %51 = arith.addf %50, %6 : vector<8x8xf32>
    %cst_21 = arith.constant dense<0xFF800000> : vector<8xf32>
    %52 = vector.multi_reduction <maximumf>, %51, %cst_21 [1] : vector<8x8xf32> to vector<8xf32>
    %53 = vector.shape_cast %52 : vector<8xf32> to vector<8x1xf32>
    %54 = vector.broadcast %53 : vector<8x1xf32> to vector<8x8xf32>
    %55 = arith.subf %51, %54 : vector<8x8xf32>
    %56 = math.exp %55 : vector<8x8xf32>
    %cst_22 = arith.constant dense<0.000000e+00> : vector<8xf32>
    %57 = vector.multi_reduction <add>, %56, %cst_22 [1] : vector<8x8xf32> to vector<8xf32>
    %58 = vector.shape_cast %57 : vector<8xf32> to vector<8x1xf32>
    %59 = tpu.reciprocal %58 {approx = true} : vector<8x1xf32> -> vector<8x1xf32>
    %60 = vector.broadcast %59 : vector<8x1xf32> to vector<8x8xf32>
    %61 = arith.mulf %56, %60 : vector<8x8xf32>
    %62 = arith.truncf %61 : vector<8x8xf32> to vector<8x8xbf16>
    %cst_23 = arith.constant dense<0.000000e+00> : vector<8x8xf32>
    %63 = tpu.matmul %62, %47, %cst_23 {dimension_numbers = #tpu.dot_dimension_numbers<[1], [0], [0], [1], [0, 0, 1, 1], [], []>} : vector<8x8xbf16>, vector<8x8xbf16>, vector<8x8xf32> -> vector<8x8xf32>
    %64 = vector.extract_strided_slice %1 {offsets = [0, 24], sizes = [8, 8], strides = [1, 1]} : vector<8x32xbf16> to vector<8x8xbf16>
    %65 = vector.extract_strided_slice %3 {offsets = [0, 24], sizes = [8, 8], strides = [1, 1]} : vector<8x32xbf16> to vector<8x8xbf16>
    %66 = vector.extract_strided_slice %5 {offsets = [0, 24], sizes = [8, 8], strides = [1, 1]} : vector<8x32xbf16> to vector<8x8xbf16>
    %cst_24 = arith.constant dense<0.000000e+00> : vector<8x8xf32>
    %67 = tpu.matmul %64, %65, %cst_24 {dimension_numbers = #tpu.dot_dimension_numbers<[1], [1], [0], [0], [0, 0, 1, 0], [], []>} : vector<8x8xbf16>, vector<8x8xbf16>, vector<8x8xf32> -> vector<8x8xf32>
    %cst_25 = arith.constant 0.353553385 : f32
    %68 = vector.broadcast %cst_25 : f32 to vector<8x8xf32>
    %69 = arith.mulf %67, %68 : vector<8x8xf32>
    %70 = arith.addf %69, %6 : vector<8x8xf32>
    %cst_26 = arith.constant dense<0xFF800000> : vector<8xf32>
    %71 = vector.multi_reduction <maximumf>, %70, %cst_26 [1] : vector<8x8xf32> to vector<8xf32>
    %72 = vector.shape_cast %71 : vector<8xf32> to vector<8x1xf32>
    %73 = vector.broadcast %72 : vector<8x1xf32> to vector<8x8xf32>
    %74 = arith.subf %70, %73 : vector<8x8xf32>
    %75 = math.exp %74 : vector<8x8xf32>
    %cst_27 = arith.constant dense<0.000000e+00> : vector<8xf32>
    %76 = vector.multi_reduction <add>, %75, %cst_27 [1] : vector<8x8xf32> to vector<8xf32>
    %77 = vector.shape_cast %76 : vector<8xf32> to vector<8x1xf32>
    %78 = tpu.reciprocal %77 {approx = true} : vector<8x1xf32> -> vector<8x1xf32>
    %79 = vector.broadcast %78 : vector<8x1xf32> to vector<8x8xf32>
    %80 = arith.mulf %75, %79 : vector<8x8xf32>
    %81 = arith.truncf %80 : vector<8x8xf32> to vector<8x8xbf16>
    %cst_28 = arith.constant dense<0.000000e+00> : vector<8x8xf32>
    %82 = tpu.matmul %81, %66, %cst_28 {dimension_numbers = #tpu.dot_dimension_numbers<[1], [0], [0], [1], [0, 0, 1, 1], [], []>} : vector<8x8xbf16>, vector<8x8xbf16>, vector<8x8xf32> -> vector<8x8xf32>
    %83 = tpu.concatenate %25, %44, %63, %82 in 1 : vector<8x8xf32>, vector<8x8xf32>, vector<8x8xf32>, vector<8x8xf32> -> vector<8x32xf32>
    %84 = arith.truncf %83 : vector<8x32xf32> to vector<8x32xbf16>
    %c0_29 = arith.constant 0 : index
    %c0_30 = arith.constant 0 : index
    %c0_31 = arith.constant 0 : index
    %85 = vector.load %arg5[%c0_29, %c0_30, %c0_31] : memref<1x8x32xbf16, #tpu.memory_space<vmem>>, vector<1x8x32xbf16>
    %86 = vector.shape_cast %85 : vector<1x8x32xbf16> to vector<8x32xbf16>
    %87 = vector.shape_cast %84 : vector<8x32xbf16> to vector<1x8x32xbf16>
    tpu.vector_store %arg5[%c0_29, %c0_30, %c0_31], %87 {strides = array<i32>} : memref<1x8x32xbf16, #tpu.memory_space<vmem>>, vector<1x8x32xbf16>,
    return
  }
  func.func @transform_0(%arg0: i32) -> (i32, i32, i32) {
    %c0_i32 = arith.constant 0 : i32
    %c0_i32_0 = arith.constant 0 : i32
    %c0_i32_1 = arith.constant 0 : i32
    return %arg0, %c0_i32, %c0_i32_0 : i32, i32, i32
  }
  func.func @transform_1(%arg0: i32) -> (i32, i32, i32) {
    %c0_i32 = arith.constant 0 : i32
    %c0_i32_0 = arith.constant 0 : i32
    %c0_i32_1 = arith.constant 0 : i32
    return %arg0, %c0_i32, %c0_i32_0 : i32, i32, i32
  }
  func.func @transform_2(%arg0: i32) -> (i32, i32, i32) {
    %c0_i32 = arith.constant 0 : i32
    %c0_i32_0 = arith.constant 0 : i32
    %c0_i32_1 = arith.constant 0 : i32
    return %arg0, %c0_i32, %c0_i32_0 : i32, i32, i32
  }
  func.func @transform_3(%arg0: i32) -> (i32, i32) {
    %c0_i32 = arith.constant 0 : i32
    %c0_i32_0 = arith.constant 0 : i32
    %c0_i32_1 = arith.constant 0 : i32
    return %c0_i32, %c0_i32_0 : i32, i32
  }
  func.func @transform_4(%arg0: i32) -> (i32, i32, i32) {
    %c0_i32 = arith.constant 0 : i32
    %c0_i32_0 = arith.constant 0 : i32
    %c0_i32_1 = arith.constant 0 : i32
    return %arg0, %c0_i32, %c0_i32_0 : i32, i32, i32
  }
}

module attributes {stable_mosaic.version = 11 : i64} {
  func.func @_proj_add_ln_kernel(%arg0: i32, %arg1: memref<16x32xbf16, #tpu.memory_space<vmem>>, %arg2: memref<32x32xbf16, #tpu.memory_space<vmem>>, %arg3: memref<1x32xf32, #tpu.memory_space<vmem>>, %arg4: memref<16x32xf32, #tpu.memory_space<vmem>>, %arg5: memref<1x32xf32, #tpu.memory_space<vmem>>, %arg6: memref<1x32xf32, #tpu.memory_space<vmem>>, %arg7: memref<16x32xf32, #tpu.memory_space<vmem>>) attributes {dimension_semantics = [#tpu.dimension_semantics<parallel>], iteration_bounds = array<i64: 1>, scalar_prefetch = 0 : i64, scratch_operands = 0 : i64, tpu.core_type = #tpu.core_type<tc>, window_params = [{transform_indices = @transform_0, window_bounds = array<i64: 16, 32>}, {pipeline_mode = #tpu.pipeline_mode<synchronous>, transform_indices = @transform_1, window_bounds = array<i64: 32, 32>}, {pipeline_mode = #tpu.pipeline_mode<synchronous>, transform_indices = @transform_2, window_bounds = array<i64: 1, 32>}, {transform_indices = @transform_3, window_bounds = array<i64: 16, 32>}, {pipeline_mode = #tpu.pipeline_mode<synchronous>, transform_indices = @transform_4, window_bounds = array<i64: 1, 32>}, {pipeline_mode = #tpu.pipeline_mode<synchronous>, transform_indices = @transform_5, window_bounds = array<i64: 1, 32>}, {transform_indices = @transform_6, window_bounds = array<i64: 16, 32>}]} {
    %c0 = arith.constant 0 : index
    %c0_0 = arith.constant 0 : index
    %0 = vector.load %arg1[%c0, %c0_0] : memref<16x32xbf16, #tpu.memory_space<vmem>>, vector<16x32xbf16>
    %c0_1 = arith.constant 0 : index
    %c0_2 = arith.constant 0 : index
    %1 = vector.load %arg2[%c0_1, %c0_2] : memref<32x32xbf16, #tpu.memory_space<vmem>>, vector<32x32xbf16>
    %cst = arith.constant dense<0.000000e+00> : vector<16x32xf32>
    %2 = tpu.matmul %0, %1, %cst {dimension_numbers = #tpu.dot_dimension_numbers<[1], [0], [0], [1], [0, 0, 1, 1], [], []>} : vector<16x32xbf16>, vector<32x32xbf16>, vector<16x32xf32> -> vector<16x32xf32>
    %c0_3 = arith.constant 0 : index
    %c0_4 = arith.constant 0 : index
    %3 = vector.load %arg3[%c0_3, %c0_4] : memref<1x32xf32, #tpu.memory_space<vmem>>, vector<1x32xf32>
    %4 = vector.broadcast %3 : vector<1x32xf32> to vector<16x32xf32>
    %5 = arith.addf %2, %4 : vector<16x32xf32>
    %c0_5 = arith.constant 0 : index
    %c0_6 = arith.constant 0 : index
    %6 = vector.load %arg4[%c0_5, %c0_6] : memref<16x32xf32, #tpu.memory_space<vmem>>, vector<16x32xf32>
    %7 = arith.addf %5, %6 : vector<16x32xf32>
    %cst_7 = arith.constant dense<0.000000e+00> : vector<16xf32>
    %8 = vector.multi_reduction <add>, %7, %cst_7 [1] : vector<16x32xf32> to vector<16xf32>
    %9 = vector.shape_cast %8 : vector<16xf32> to vector<16x1xf32>
    %cst_8 = arith.constant 3.200000e+01 : f32
    %10 = vector.broadcast %cst_8 : f32 to vector<16x1xf32>
    %11 = arith.divf %9, %10 : vector<16x1xf32>
    %12 = vector.broadcast %11 : vector<16x1xf32> to vector<16x32xf32>
    %13 = arith.subf %7, %12 : vector<16x32xf32>
    %14 = arith.mulf %13, %13 : vector<16x32xf32>
    %cst_9 = arith.constant dense<0.000000e+00> : vector<16xf32>
    %15 = vector.multi_reduction <add>, %14, %cst_9 [1] : vector<16x32xf32> to vector<16xf32>
    %16 = vector.shape_cast %15 : vector<16xf32> to vector<16x1xf32>
    %cst_10 = arith.constant 3.200000e+01 : f32
    %17 = vector.broadcast %cst_10 : f32 to vector<16x1xf32>
    %18 = arith.divf %16, %17 : vector<16x1xf32>
    %19 = vector.broadcast %11 : vector<16x1xf32> to vector<16x32xf32>
    %20 = arith.subf %7, %19 : vector<16x32xf32>
    %cst_11 = arith.constant 9.99999974E-6 : f32
    %21 = vector.broadcast %cst_11 : f32 to vector<16x1xf32>
    %22 = arith.addf %18, %21 : vector<16x1xf32>
    %23 = math.rsqrt %22 : vector<16x1xf32>
    %24 = vector.broadcast %23 : vector<16x1xf32> to vector<16x32xf32>
    %25 = arith.mulf %20, %24 : vector<16x32xf32>
    %c0_12 = arith.constant 0 : index
    %c0_13 = arith.constant 0 : index
    %26 = vector.load %arg5[%c0_12, %c0_13] : memref<1x32xf32, #tpu.memory_space<vmem>>, vector<1x32xf32>
    %27 = vector.broadcast %26 : vector<1x32xf32> to vector<16x32xf32>
    %28 = arith.mulf %25, %27 : vector<16x32xf32>
    %c0_14 = arith.constant 0 : index
    %c0_15 = arith.constant 0 : index
    %29 = vector.load %arg6[%c0_14, %c0_15] : memref<1x32xf32, #tpu.memory_space<vmem>>, vector<1x32xf32>
    %30 = vector.broadcast %29 : vector<1x32xf32> to vector<16x32xf32>
    %31 = arith.addf %28, %30 : vector<16x32xf32>
    %c0_16 = arith.constant 0 : index
    %c0_17 = arith.constant 0 : index
    %32 = vector.load %arg7[%c0_16, %c0_17] : memref<16x32xf32, #tpu.memory_space<vmem>>, vector<16x32xf32>
    tpu.vector_store %arg7[%c0_16, %c0_17], %31 {strides = array<i32>} : memref<16x32xf32, #tpu.memory_space<vmem>>, vector<16x32xf32>,
    return
  }
  func.func @transform_0(%arg0: i32) -> (i32, i32) {
    %c0_i32 = arith.constant 0 : i32
    %c0_i32_0 = arith.constant 0 : i32
    return %arg0, %c0_i32 : i32, i32
  }
  func.func @transform_1(%arg0: i32) -> (i32, i32) {
    %c0_i32 = arith.constant 0 : i32
    %c0_i32_0 = arith.constant 0 : i32
    %c0_i32_1 = arith.constant 0 : i32
    return %c0_i32, %c0_i32_0 : i32, i32
  }
  func.func @transform_2(%arg0: i32) -> (i32, i32) {
    %c0_i32 = arith.constant 0 : i32
    %c0_i32_0 = arith.constant 0 : i32
    %c0_i32_1 = arith.constant 0 : i32
    return %c0_i32, %c0_i32_0 : i32, i32
  }
  func.func @transform_3(%arg0: i32) -> (i32, i32) {
    %c0_i32 = arith.constant 0 : i32
    %c0_i32_0 = arith.constant 0 : i32
    return %arg0, %c0_i32 : i32, i32
  }
  func.func @transform_4(%arg0: i32) -> (i32, i32) {
    %c0_i32 = arith.constant 0 : i32
    %c0_i32_0 = arith.constant 0 : i32
    %c0_i32_1 = arith.constant 0 : i32
    return %c0_i32, %c0_i32_0 : i32, i32
  }
  func.func @transform_5(%arg0: i32) -> (i32, i32) {
    %c0_i32 = arith.constant 0 : i32
    %c0_i32_0 = arith.constant 0 : i32
    %c0_i32_1 = arith.constant 0 : i32
    return %c0_i32, %c0_i32_0 : i32, i32
  }
  func.func @transform_6(%arg0: i32) -> (i32, i32) {
    %c0_i32 = arith.constant 0 : i32
    %c0_i32_0 = arith.constant 0 : i32
    return %arg0, %c0_i32 : i32, i32
  }
}

module attributes {stable_mosaic.version = 11 : i64} {
  func.func @_linear_kernel(%arg0: i32, %arg1: i32, %arg2: i32, %arg3: memref<16x32xbf16, #tpu.memory_space<vmem>>, %arg4: memref<32x32xbf16, #tpu.memory_space<vmem>>, %arg5: memref<1x32xf32, #tpu.memory_space<vmem>>, %arg6: memref<16x32xbf16, #tpu.memory_space<vmem>>, %arg7: memref<16x32xf32, #tpu.memory_space<vmem>>) attributes {dimension_semantics = [#tpu.dimension_semantics<parallel>, #tpu.dimension_semantics<parallel>, #tpu.dimension_semantics<arbitrary>], iteration_bounds = array<i64: 1, 1, 1>, scalar_prefetch = 0 : i64, scratch_operands = 1 : i64, tpu.core_type = #tpu.core_type<tc>, window_params = [{transform_indices = @transform_0, window_bounds = array<i64: 16, 32>}, {transform_indices = @transform_1, window_bounds = array<i64: 32, 32>}, {transform_indices = @transform_2, window_bounds = array<i64: 1, 32>}, {transform_indices = @transform_3, window_bounds = array<i64: 16, 32>}]} {
    %c0_i32 = arith.constant 0 : i32
    %0 = arith.cmpi eq, %arg2, %c0_i32 : i32
    %1 = arith.extui %0 : i1 to i32
    %c0_i32_0 = arith.constant 0 : i32
    %2 = arith.cmpi ne, %1, %c0_i32_0 : i32
    scf.if %2 {
      %cst_10 = arith.constant 0.000000e+00 : f32
      %12 = vector.broadcast %cst_10 : f32 to vector<16x32xf32>
      %c0_11 = arith.constant 0 : index
      %c0_12 = arith.constant 0 : index
      %13 = vector.load %arg7[%c0_11, %c0_12] : memref<16x32xf32, #tpu.memory_space<vmem>>, vector<16x32xf32>
      tpu.vector_store %arg7[%c0_11, %c0_12], %12 {strides = array<i32>} : memref<16x32xf32, #tpu.memory_space<vmem>>, vector<16x32xf32>,
    } else {
    }
    %c0 = arith.constant 0 : index
    %c0_1 = arith.constant 0 : index
    %3 = vector.load %arg7[%c0, %c0_1] : memref<16x32xf32, #tpu.memory_space<vmem>>, vector<16x32xf32>
    %c0_2 = arith.constant 0 : index
    %c0_3 = arith.constant 0 : index
    %4 = vector.load %arg3[%c0_2, %c0_3] : memref<16x32xbf16, #tpu.memory_space<vmem>>, vector<16x32xbf16>
    %c0_4 = arith.constant 0 : index
    %c0_5 = arith.constant 0 : index
    %5 = vector.load %arg4[%c0_4, %c0_5] : memref<32x32xbf16, #tpu.memory_space<vmem>>, vector<32x32xbf16>
    %cst = arith.constant dense<0.000000e+00> : vector<16x32xf32>
    %6 = tpu.matmul %4, %5, %cst {dimension_numbers = #tpu.dot_dimension_numbers<[1], [0], [0], [1], [0, 0, 1, 1], [], []>} : vector<16x32xbf16>, vector<32x32xbf16>, vector<16x32xf32> -> vector<16x32xf32>
    %7 = arith.addf %3, %6 : vector<16x32xf32>
    %c0_6 = arith.constant 0 : index
    %c0_7 = arith.constant 0 : index
    %8 = vector.load %arg7[%c0_6, %c0_7] : memref<16x32xf32, #tpu.memory_space<vmem>>, vector<16x32xf32>
    tpu.vector_store %arg7[%c0_6, %c0_7], %7 {strides = array<i32>} : memref<16x32xf32, #tpu.memory_space<vmem>>, vector<16x32xf32>,
    %c0_i32_8 = arith.constant 0 : i32
    %9 = arith.cmpi eq, %arg2, %c0_i32_8 : i32
    %10 = arith.extui %9 : i1 to i32
    %c0_i32_9 = arith.constant 0 : i32
    %11 = arith.cmpi ne, %10, %c0_i32_9 : i32
    scf.if %11 {
      %c0_10 = arith.constant 0 : index
      %c0_11 = arith.constant 0 : index
      %12 = vector.load %arg7[%c0_10, %c0_11] : memref<16x32xf32, #tpu.memory_space<vmem>>, vector<16x32xf32>
      %c0_12 = arith.constant 0 : index
      %c0_13 = arith.constant 0 : index
      %13 = vector.load %arg5[%c0_12, %c0_13] : memref<1x32xf32, #tpu.memory_space<vmem>>, vector<1x32xf32>
      %14 = vector.broadcast %13 : vector<1x32xf32> to vector<16x32xf32>
      %15 = arith.addf %12, %14 : vector<16x32xf32>
      %16 = arith.truncf %15 : vector<16x32xf32> to vector<16x32xbf16>
      %c0_14 = arith.constant 0 : index
      %c0_15 = arith.constant 0 : index
      %17 = vector.load %arg6[%c0_14, %c0_15] : memref<16x32xbf16, #tpu.memory_space<vmem>>, vector<16x32xbf16>
      tpu.vector_store %arg6[%c0_14, %c0_15], %16 {strides = array<i32>} : memref<16x32xbf16, #tpu.memory_space<vmem>>, vector<16x32xbf16>,
    } else {
    }
    return
  }
  func.func @transform_0(%arg0: i32, %arg1: i32, %arg2: i32) -> (i32, i32) {
    %c0_i32 = arith.constant 0 : i32
    return %arg0, %arg2 : i32, i32
  }
  func.func @transform_1(%arg0: i32, %arg1: i32, %arg2: i32) -> (i32, i32) {
    %c0_i32 = arith.constant 0 : i32
    return %arg2, %arg1 : i32, i32
  }
  func.func @transform_2(%arg0: i32, %arg1: i32, %arg2: i32) -> (i32, i32) {
    %c0_i32 = arith.constant 0 : i32
    %c0_i32_0 = arith.constant 0 : i32
    return %c0_i32, %arg1 : i32, i32
  }
  func.func @transform_3(%arg0: i32, %arg1: i32, %arg2: i32) -> (i32, i32) {
    %c0_i32 = arith.constant 0 : i32
    return %arg0, %arg1 : i32, i32
  }
}

module attributes {stable_mosaic.version = 11 : i64} {
  func.func @_linear_kernel(%arg0: i32, %arg1: i32, %arg2: i32, %arg3: memref<16x32xbf16, #tpu.memory_space<vmem>>, %arg4: memref<32x64xbf16, #tpu.memory_space<vmem>>, %arg5: memref<1x64xf32, #tpu.memory_space<vmem>>, %arg6: memref<16x64xbf16, #tpu.memory_space<vmem>>, %arg7: memref<16x64xf32, #tpu.memory_space<vmem>>) attributes {dimension_semantics = [#tpu.dimension_semantics<parallel>, #tpu.dimension_semantics<parallel>, #tpu.dimension_semantics<arbitrary>], iteration_bounds = array<i64: 1, 1, 1>, scalar_prefetch = 0 : i64, scratch_operands = 1 : i64, tpu.core_type = #tpu.core_type<tc>, window_params = [{transform_indices = @transform_0, window_bounds = array<i64: 16, 32>}, {transform_indices = @transform_1, window_bounds = array<i64: 32, 64>}, {transform_indices = @transform_2, window_bounds = array<i64: 1, 64>}, {transform_indices = @transform_3, window_bounds = array<i64: 16, 64>}]} {
    %c0_i32 = arith.constant 0 : i32
    %0 = arith.cmpi eq, %arg2, %c0_i32 : i32
    %1 = arith.extui %0 : i1 to i32
    %c0_i32_0 = arith.constant 0 : i32
    %2 = arith.cmpi ne, %1, %c0_i32_0 : i32
    scf.if %2 {
      %cst_10 = arith.constant 0.000000e+00 : f32
      %12 = vector.broadcast %cst_10 : f32 to vector<16x64xf32>
      %c0_11 = arith.constant 0 : index
      %c0_12 = arith.constant 0 : index
      %13 = vector.load %arg7[%c0_11, %c0_12] : memref<16x64xf32, #tpu.memory_space<vmem>>, vector<16x64xf32>
      tpu.vector_store %arg7[%c0_11, %c0_12], %12 {strides = array<i32>} : memref<16x64xf32, #tpu.memory_space<vmem>>, vector<16x64xf32>,
    } else {
    }
    %c0 = arith.constant 0 : index
    %c0_1 = arith.constant 0 : index
    %3 = vector.load %arg7[%c0, %c0_1] : memref<16x64xf32, #tpu.memory_space<vmem>>, vector<16x64xf32>
    %c0_2 = arith.constant 0 : index
    %c0_3 = arith.constant 0 : index
    %4 = vector.load %arg3[%c0_2, %c0_3] : memref<16x32xbf16, #tpu.memory_space<vmem>>, vector<16x32xbf16>
    %c0_4 = arith.constant 0 : index
    %c0_5 = arith.constant 0 : index
    %5 = vector.load %arg4[%c0_4, %c0_5] : memref<32x64xbf16, #tpu.memory_space<vmem>>, vector<32x64xbf16>
    %cst = arith.constant dense<0.000000e+00> : vector<16x64xf32>
    %6 = tpu.matmul %4, %5, %cst {dimension_numbers = #tpu.dot_dimension_numbers<[1], [0], [0], [1], [0, 0, 1, 1], [], []>} : vector<16x32xbf16>, vector<32x64xbf16>, vector<16x64xf32> -> vector<16x64xf32>
    %7 = arith.addf %3, %6 : vector<16x64xf32>
    %c0_6 = arith.constant 0 : index
    %c0_7 = arith.constant 0 : index
    %8 = vector.load %arg7[%c0_6, %c0_7] : memref<16x64xf32, #tpu.memory_space<vmem>>, vector<16x64xf32>
    tpu.vector_store %arg7[%c0_6, %c0_7], %7 {strides = array<i32>} : memref<16x64xf32, #tpu.memory_space<vmem>>, vector<16x64xf32>,
    %c0_i32_8 = arith.constant 0 : i32
    %9 = arith.cmpi eq, %arg2, %c0_i32_8 : i32
    %10 = arith.extui %9 : i1 to i32
    %c0_i32_9 = arith.constant 0 : i32
    %11 = arith.cmpi ne, %10, %c0_i32_9 : i32
    scf.if %11 {
      %c0_10 = arith.constant 0 : index
      %c0_11 = arith.constant 0 : index
      %12 = vector.load %arg7[%c0_10, %c0_11] : memref<16x64xf32, #tpu.memory_space<vmem>>, vector<16x64xf32>
      %c0_12 = arith.constant 0 : index
      %c0_13 = arith.constant 0 : index
      %13 = vector.load %arg5[%c0_12, %c0_13] : memref<1x64xf32, #tpu.memory_space<vmem>>, vector<1x64xf32>
      %14 = vector.broadcast %13 : vector<1x64xf32> to vector<16x64xf32>
      %15 = arith.addf %12, %14 : vector<16x64xf32>
      %16 = arith.truncf %15 : vector<16x64xf32> to vector<16x64xbf16>
      %c0_14 = arith.constant 0 : index
      %c0_15 = arith.constant 0 : index
      %17 = vector.load %arg6[%c0_14, %c0_15] : memref<16x64xbf16, #tpu.memory_space<vmem>>, vector<16x64xbf16>
      tpu.vector_store %arg6[%c0_14, %c0_15], %16 {strides = array<i32>} : memref<16x64xbf16, #tpu.memory_space<vmem>>, vector<16x64xbf16>,
    } else {
    }
    return
  }
  func.func @transform_0(%arg0: i32, %arg1: i32, %arg2: i32) -> (i32, i32) {
    %c0_i32 = arith.constant 0 : i32
    return %arg0, %arg2 : i32, i32
  }
  func.func @transform_1(%arg0: i32, %arg1: i32, %arg2: i32) -> (i32, i32) {
    %c0_i32 = arith.constant 0 : i32
    return %arg2, %arg1 : i32, i32
  }
  func.func @transform_2(%arg0: i32, %arg1: i32, %arg2: i32) -> (i32, i32) {
    %c0_i32 = arith.constant 0 : i32
    %c0_i32_0 = arith.constant 0 : i32
    return %c0_i32, %arg1 : i32, i32
  }
  func.func @transform_3(%arg0: i32, %arg1: i32, %arg2: i32) -> (i32, i32) {
    %c0_i32 = arith.constant 0 : i32
    return %arg0, %arg1 : i32, i32
  }
}

module attributes {stable_mosaic.version = 11 : i64} {
  func.func @_ffn_add_ln_kernel(%arg0: i32, %arg1: memref<16x32xbf16, #tpu.memory_space<vmem>>, %arg2: memref<32x64xbf16, #tpu.memory_space<vmem>>, %arg3: memref<1x64xf32, #tpu.memory_space<vmem>>, %arg4: memref<64x32xbf16, #tpu.memory_space<vmem>>, %arg5: memref<1x32xf32, #tpu.memory_space<vmem>>, %arg6: memref<16x32xf32, #tpu.memory_space<vmem>>, %arg7: memref<1x32xf32, #tpu.memory_space<vmem>>, %arg8: memref<1x32xf32, #tpu.memory_space<vmem>>, %arg9: memref<16x32xf32, #tpu.memory_space<vmem>>) attributes {dimension_semantics = [#tpu.dimension_semantics<parallel>], iteration_bounds = array<i64: 1>, scalar_prefetch = 0 : i64, scratch_operands = 0 : i64, tpu.core_type = #tpu.core_type<tc>, window_params = [{transform_indices = @transform_0, window_bounds = array<i64: 16, 32>}, {pipeline_mode = #tpu.pipeline_mode<synchronous>, transform_indices = @transform_1, window_bounds = array<i64: 32, 64>}, {pipeline_mode = #tpu.pipeline_mode<synchronous>, transform_indices = @transform_2, window_bounds = array<i64: 1, 64>}, {pipeline_mode = #tpu.pipeline_mode<synchronous>, transform_indices = @transform_3, window_bounds = array<i64: 64, 32>}, {pipeline_mode = #tpu.pipeline_mode<synchronous>, transform_indices = @transform_4, window_bounds = array<i64: 1, 32>}, {transform_indices = @transform_5, window_bounds = array<i64: 16, 32>}, {pipeline_mode = #tpu.pipeline_mode<synchronous>, transform_indices = @transform_6, window_bounds = array<i64: 1, 32>}, {pipeline_mode = #tpu.pipeline_mode<synchronous>, transform_indices = @transform_7, window_bounds = array<i64: 1, 32>}, {transform_indices = @transform_8, window_bounds = array<i64: 16, 32>}]} {
    %c0 = arith.constant 0 : index
    %c0_0 = arith.constant 0 : index
    %0 = vector.load %arg1[%c0, %c0_0] : memref<16x32xbf16, #tpu.memory_space<vmem>>, vector<16x32xbf16>
    %c0_1 = arith.constant 0 : index
    %c0_2 = arith.constant 0 : index
    %1 = vector.load %arg2[%c0_1, %c0_2] : memref<32x64xbf16, #tpu.memory_space<vmem>>, vector<32x64xbf16>
    %cst = arith.constant dense<0.000000e+00> : vector<16x64xf32>
    %2 = tpu.matmul %0, %1, %cst {dimension_numbers = #tpu.dot_dimension_numbers<[1], [0], [0], [1], [0, 0, 1, 1], [], []>} : vector<16x32xbf16>, vector<32x64xbf16>, vector<16x64xf32> -> vector<16x64xf32>
    %c0_3 = arith.constant 0 : index
    %c0_4 = arith.constant 0 : index
    %3 = vector.load %arg3[%c0_3, %c0_4] : memref<1x64xf32, #tpu.memory_space<vmem>>, vector<1x64xf32>
    %4 = vector.broadcast %3 : vector<1x64xf32> to vector<16x64xf32>
    %5 = arith.addf %2, %4 : vector<16x64xf32>
    %cst_5 = arith.constant 0.000000e+00 : f32
    %6 = vector.broadcast %cst_5 : f32 to vector<16x64xf32>
    %7 = arith.maximumf %5, %6 : vector<16x64xf32>
    %8 = arith.truncf %7 : vector<16x64xf32> to vector<16x64xbf16>
    %c0_6 = arith.constant 0 : index
    %c0_7 = arith.constant 0 : index
    %9 = vector.load %arg4[%c0_6, %c0_7] : memref<64x32xbf16, #tpu.memory_space<vmem>>, vector<64x32xbf16>
    %cst_8 = arith.constant dense<0.000000e+00> : vector<16x32xf32>
    %10 = tpu.matmul %8, %9, %cst_8 {dimension_numbers = #tpu.dot_dimension_numbers<[1], [0], [0], [1], [0, 0, 1, 1], [], []>} : vector<16x64xbf16>, vector<64x32xbf16>, vector<16x32xf32> -> vector<16x32xf32>
    %c0_9 = arith.constant 0 : index
    %c0_10 = arith.constant 0 : index
    %11 = vector.load %arg5[%c0_9, %c0_10] : memref<1x32xf32, #tpu.memory_space<vmem>>, vector<1x32xf32>
    %12 = vector.broadcast %11 : vector<1x32xf32> to vector<16x32xf32>
    %13 = arith.addf %10, %12 : vector<16x32xf32>
    %c0_11 = arith.constant 0 : index
    %c0_12 = arith.constant 0 : index
    %14 = vector.load %arg6[%c0_11, %c0_12] : memref<16x32xf32, #tpu.memory_space<vmem>>, vector<16x32xf32>
    %15 = arith.addf %13, %14 : vector<16x32xf32>
    %cst_13 = arith.constant dense<0.000000e+00> : vector<16xf32>
    %16 = vector.multi_reduction <add>, %15, %cst_13 [1] : vector<16x32xf32> to vector<16xf32>
    %17 = vector.shape_cast %16 : vector<16xf32> to vector<16x1xf32>
    %cst_14 = arith.constant 3.200000e+01 : f32
    %18 = vector.broadcast %cst_14 : f32 to vector<16x1xf32>
    %19 = arith.divf %17, %18 : vector<16x1xf32>
    %20 = vector.broadcast %19 : vector<16x1xf32> to vector<16x32xf32>
    %21 = arith.subf %15, %20 : vector<16x32xf32>
    %22 = arith.mulf %21, %21 : vector<16x32xf32>
    %cst_15 = arith.constant dense<0.000000e+00> : vector<16xf32>
    %23 = vector.multi_reduction <add>, %22, %cst_15 [1] : vector<16x32xf32> to vector<16xf32>
    %24 = vector.shape_cast %23 : vector<16xf32> to vector<16x1xf32>
    %cst_16 = arith.constant 3.200000e+01 : f32
    %25 = vector.broadcast %cst_16 : f32 to vector<16x1xf32>
    %26 = arith.divf %24, %25 : vector<16x1xf32>
    %27 = vector.broadcast %19 : vector<16x1xf32> to vector<16x32xf32>
    %28 = arith.subf %15, %27 : vector<16x32xf32>
    %cst_17 = arith.constant 9.99999974E-6 : f32
    %29 = vector.broadcast %cst_17 : f32 to vector<16x1xf32>
    %30 = arith.addf %26, %29 : vector<16x1xf32>
    %31 = math.rsqrt %30 : vector<16x1xf32>
    %32 = vector.broadcast %31 : vector<16x1xf32> to vector<16x32xf32>
    %33 = arith.mulf %28, %32 : vector<16x32xf32>
    %c0_18 = arith.constant 0 : index
    %c0_19 = arith.constant 0 : index
    %34 = vector.load %arg7[%c0_18, %c0_19] : memref<1x32xf32, #tpu.memory_space<vmem>>, vector<1x32xf32>
    %35 = vector.broadcast %34 : vector<1x32xf32> to vector<16x32xf32>
    %36 = arith.mulf %33, %35 : vector<16x32xf32>
    %c0_20 = arith.constant 0 : index
    %c0_21 = arith.constant 0 : index
    %37 = vector.load %arg8[%c0_20, %c0_21] : memref<1x32xf32, #tpu.memory_space<vmem>>, vector<1x32xf32>
    %38 = vector.broadcast %37 : vector<1x32xf32> to vector<16x32xf32>
    %39 = arith.addf %36, %38 : vector<16x32xf32>
    %c0_22 = arith.constant 0 : index
    %c0_23 = arith.constant 0 : index
    %40 = vector.load %arg9[%c0_22, %c0_23] : memref<16x32xf32, #tpu.memory_space<vmem>>, vector<16x32xf32>
    tpu.vector_store %arg9[%c0_22, %c0_23], %39 {strides = array<i32>} : memref<16x32xf32, #tpu.memory_space<vmem>>, vector<16x32xf32>,
    return
  }
  func.func @transform_0(%arg0: i32) -> (i32, i32) {
    %c0_i32 = arith.constant 0 : i32
    %c0_i32_0 = arith.constant 0 : i32
    return %arg0, %c0_i32 : i32, i32
  }
  func.func @transform_1(%arg0: i32) -> (i32, i32) {
    %c0_i32 = arith.constant 0 : i32
    %c0_i32_0 = arith.constant 0 : i32
    %c0_i32_1 = arith.constant 0 : i32
    return %c0_i32, %c0_i32_0 : i32, i32
  }
  func.func @transform_2(%arg0: i32) -> (i32, i32) {
    %c0_i32 = arith.constant 0 : i32
    %c0_i32_0 = arith.constant 0 : i32
    %c0_i32_1 = arith.constant 0 : i32
    return %c0_i32, %c0_i32_0 : i32, i32
  }
  func.func @transform_3(%arg0: i32) -> (i32, i32) {
    %c0_i32 = arith.constant 0 : i32
    %c0_i32_0 = arith.constant 0 : i32
    %c0_i32_1 = arith.constant 0 : i32
    return %c0_i32, %c0_i32_0 : i32, i32
  }
  func.func @transform_4(%arg0: i32) -> (i32, i32) {
    %c0_i32 = arith.constant 0 : i32
    %c0_i32_0 = arith.constant 0 : i32
    %c0_i32_1 = arith.constant 0 : i32
    return %c0_i32, %c0_i32_0 : i32, i32
  }
  func.func @transform_5(%arg0: i32) -> (i32, i32) {
    %c0_i32 = arith.constant 0 : i32
    %c0_i32_0 = arith.constant 0 : i32
    return %arg0, %c0_i32 : i32, i32
  }
  func.func @transform_6(%arg0: i32) -> (i32, i32) {
    %c0_i32 = arith.constant 0 : i32
    %c0_i32_0 = arith.constant 0 : i32
    %c0_i32_1 = arith.constant 0 : i32
    return %c0_i32, %c0_i32_0 : i32, i32
  }
  func.func @transform_7(%arg0: i32) -> (i32, i32) {
    %c0_i32 = arith.constant 0 : i32
    %c0_i32_0 = arith.constant 0 : i32
    %c0_i32_1 = arith.constant 0 : i32
    return %c0_i32, %c0_i32_0 : i32, i32
  }
  func.func @transform_8(%arg0: i32) -> (i32, i32) {
    %c0_i32 = arith.constant 0 : i32
    %c0_i32_0 = arith.constant 0 : i32
    return %arg0, %c0_i32 : i32, i32
  }
}

module attributes {stable_mosaic.version = 11 : i64} {
  func.func @_linear_kernel(%arg0: i32, %arg1: i32, %arg2: i32, %arg3: memref<16x32xbf16, #tpu.memory_space<vmem>>, %arg4: memref<32x64xbf16, #tpu.memory_space<vmem>>, %arg5: memref<1x64xf32, #tpu.memory_space<vmem>>, %arg6: memref<16x64xf32, #tpu.memory_space<vmem>>, %arg7: memref<16x64xf32, #tpu.memory_space<vmem>>) attributes {dimension_semantics = [#tpu.dimension_semantics<parallel>, #tpu.dimension_semantics<parallel>, #tpu.dimension_semantics<arbitrary>], iteration_bounds = array<i64: 1, 1, 1>, scalar_prefetch = 0 : i64, scratch_operands = 1 : i64, tpu.core_type = #tpu.core_type<tc>, window_params = [{transform_indices = @transform_0, window_bounds = array<i64: 16, 32>}, {transform_indices = @transform_1, window_bounds = array<i64: 32, 64>}, {transform_indices = @transform_2, window_bounds = array<i64: 1, 64>}, {transform_indices = @transform_3, window_bounds = array<i64: 16, 64>}]} {
    %c0_i32 = arith.constant 0 : i32
    %0 = arith.cmpi eq, %arg2, %c0_i32 : i32
    %1 = arith.extui %0 : i1 to i32
    %c0_i32_0 = arith.constant 0 : i32
    %2 = arith.cmpi ne, %1, %c0_i32_0 : i32
    scf.if %2 {
      %cst_10 = arith.constant 0.000000e+00 : f32
      %12 = vector.broadcast %cst_10 : f32 to vector<16x64xf32>
      %c0_11 = arith.constant 0 : index
      %c0_12 = arith.constant 0 : index
      %13 = vector.load %arg7[%c0_11, %c0_12] : memref<16x64xf32, #tpu.memory_space<vmem>>, vector<16x64xf32>
      tpu.vector_store %arg7[%c0_11, %c0_12], %12 {strides = array<i32>} : memref<16x64xf32, #tpu.memory_space<vmem>>, vector<16x64xf32>,
    } else {
    }
    %c0 = arith.constant 0 : index
    %c0_1 = arith.constant 0 : index
    %3 = vector.load %arg7[%c0, %c0_1] : memref<16x64xf32, #tpu.memory_space<vmem>>, vector<16x64xf32>
    %c0_2 = arith.constant 0 : index
    %c0_3 = arith.constant 0 : index
    %4 = vector.load %arg3[%c0_2, %c0_3] : memref<16x32xbf16, #tpu.memory_space<vmem>>, vector<16x32xbf16>
    %c0_4 = arith.constant 0 : index
    %c0_5 = arith.constant 0 : index
    %5 = vector.load %arg4[%c0_4, %c0_5] : memref<32x64xbf16, #tpu.memory_space<vmem>>, vector<32x64xbf16>
    %cst = arith.constant dense<0.000000e+00> : vector<16x64xf32>
    %6 = tpu.matmul %4, %5, %cst {dimension_numbers = #tpu.dot_dimension_numbers<[1], [0], [0], [1], [0, 0, 1, 1], [], []>} : vector<16x32xbf16>, vector<32x64xbf16>, vector<16x64xf32> -> vector<16x64xf32>
    %7 = arith.addf %3, %6 : vector<16x64xf32>
    %c0_6 = arith.constant 0 : index
    %c0_7 = arith.constant 0 : index
    %8 = vector.load %arg7[%c0_6, %c0_7] : memref<16x64xf32, #tpu.memory_space<vmem>>, vector<16x64xf32>
    tpu.vector_store %arg7[%c0_6, %c0_7], %7 {strides = array<i32>} : memref<16x64xf32, #tpu.memory_space<vmem>>, vector<16x64xf32>,
    %c0_i32_8 = arith.constant 0 : i32
    %9 = arith.cmpi eq, %arg2, %c0_i32_8 : i32
    %10 = arith.extui %9 : i1 to i32
    %c0_i32_9 = arith.constant 0 : i32
    %11 = arith.cmpi ne, %10, %c0_i32_9 : i32
    scf.if %11 {
      %c0_10 = arith.constant 0 : index
      %c0_11 = arith.constant 0 : index
      %12 = vector.load %arg7[%c0_10, %c0_11] : memref<16x64xf32, #tpu.memory_space<vmem>>, vector<16x64xf32>
      %c0_12 = arith.constant 0 : index
      %c0_13 = arith.constant 0 : index
      %13 = vector.load %arg5[%c0_12, %c0_13] : memref<1x64xf32, #tpu.memory_space<vmem>>, vector<1x64xf32>
      %14 = vector.broadcast %13 : vector<1x64xf32> to vector<16x64xf32>
      %15 = arith.addf %12, %14 : vector<16x64xf32>
      %c0_14 = arith.constant 0 : index
      %c0_15 = arith.constant 0 : index
      %16 = vector.load %arg6[%c0_14, %c0_15] : memref<16x64xf32, #tpu.memory_space<vmem>>, vector<16x64xf32>
      tpu.vector_store %arg6[%c0_14, %c0_15], %15 {strides = array<i32>} : memref<16x64xf32, #tpu.memory_space<vmem>>, vector<16x64xf32>,
    } else {
    }
    return
  }
  func.func @transform_0(%arg0: i32, %arg1: i32, %arg2: i32) -> (i32, i32) {
    %c0_i32 = arith.constant 0 : i32
    return %arg0, %arg2 : i32, i32
  }
  func.func @transform_1(%arg0: i32, %arg1: i32, %arg2: i32) -> (i32, i32) {
    %c0_i32 = arith.constant 0 : i32
    return %arg2, %arg1 : i32, i32
  }
  func.func @transform_2(%arg0: i32, %arg1: i32, %arg2: i32) -> (i32, i32) {
    %c0_i32 = arith.constant 0 : i32
    %c0_i32_0 = arith.constant 0 : i32
    return %c0_i32, %arg1 : i32, i32
  }
  func.func @transform_3(%arg0: i32, %arg1: i32, %arg2: i32) -> (i32, i32) {
    %c0_i32 = arith.constant 0 : i32
    return %arg0, %arg1 : i32, i32
  }
}

</mosaic_0001>

<bundles_post_ra>
// kernel: decoder_forward.19
= control target key start
LH: loop header
LB: loop body
LE: loop exit
PB: predicated region body
PF: predicated region fallthrough
CT: control target
= control target key end

     0   :  { %v181_v0 = vmov 0.0   ;;  %vm182_vm0 = vmmov 0   ;;  %vm54_vm1 = vcmask 261120   ;;  %s255_s1 = inlined_call_operand.vmem [shape: bf16[32,32], index: 1, kind: input, shape index: {}]   ;;  %s256_s0 = inlined_call_operand.vmem [shape: bf16[16,32], index: 0, kind: input, shape index: {}]   ;;  %s257_s2 = inlined_call_operand.vmem [shape: f32[1,32], index: 2, kind: input, shape index: {}]   ;;  %s258_s3 = inlined_call_operand.vmem [shape: f32[16,32], index: 3, kind: input, shape index: {}]   ;;  %s259_s4 = inlined_call_operand.vmem [shape: f32[1,32], index: 4, kind: input, shape index: {}]   ;;  %s260_s5 = inlined_call_operand.vmem [shape: f32[1,32], index: 5, kind: input, shape index: {}]   ;;  %s261_s6 = inlined_call_operand.vmem [shape: f32[16,32], index: 6, kind: output, shape index: {}]  }
   0x1   :  { %164 = vmatprep.subr.bf16.mxu0 %v181_v0  ;;  %v174_v1 = vld [vmem:[%s255_s1] sm:$0xff]   ;;  %168 = vmatprep.mubr.msk.bf16.mxu0 %vm182_vm0, %v181_v0  ;;  %v175_v2 = vld [vmem:[%s255_s1 + $0x8] sm:$0xff]  }
   0x2   :  { %165 = vmatpush3.bf16.msra.mxu0 %v174_v1  ;;  %v176_v3 = vld [vmem:[%s256_s0] sm:$0xff]   ;;  %v100_v10 = vld [vmem:[%s258_s3 + $0x8] sm:$0xff] }
   0x3   :  { %166 = vmatprep.subr.bf16.mxu0 %v181_v0  ;;  %v154_v4 = vld [vmem:[%s257_s2] ss:$0 sm:$0xff] }
   0x4   :  { %v99_v6 = vld [vmem:[%s258_s3] sm:$0xff] }
   0x5   :  { %v159_v34 = vld [vmem:[%s259_s4] ss:$0 sm:$0xff] }
   0x6   :  { %167 = vmatpush3.bf16.msra.mxu0 %v175_v2  ;;  %v160_v36 = vld [vmem:[%s260_s5] ss:$0 sm:$0xff] }
   0x9   :  { %169 = vmatmul.mubr.msk.bf16.vlgmr.msra.gmra.mrb[0].mxu0 %vm54_vm1, %v176_v3 }
  0xdc   :  { %v92_v5 = vpop.f32.mrb[0].mxu0 }
  0xdd   :  { %v93_v7 = vadd.f32 %v154_v4, %v92_v5  ;;  %v170_v8 = vpop.f32.mrb[1].mxu0 }
  0xde   :  { %v95_v9 = vpop.f32.mrb[2].mxu0 }
  0xdf   :  { %v96_v11 = vadd.f32 %v154_v4, %v95_v9  ;;  %v171_v12 = vpop.f32.mrb[3].mxu0  ;;  %v101_v13 = vadd.f32 %v99_v6, %v93_v7 }
  0xe1   :  { %v103_v14 = vsel %vm54_vm1, %v101_v13, 0.0  ;;  %v102_v15 = vadd.f32 %v100_v10, %v96_v11 }
  0xe2   :  { %104 = vadd.xlane.f32.xlu0 %v103_v14 }
  0xe3   :  { %v106_v16 = vsel %vm54_vm1, %v102_v15, 0.0 }
  0xe6   :  { %107 = vadd.xlane.f32.xlu0 %v106_v16 }
 0x16f   :  { %v105_v17 = vpop.xlane.xlu0 %104 }
 0x170   :  { %v110_v18 = vmul.f32 0.03125, %v105_v17 }
 0x172   :  { %v112_v19 = vsub.f32 %v101_v13, %v110_v18 }
 0x173   :  { %v108_v20 = vpop.xlane.xlu0 %107 }
 0x174   :  { %v111_v21 = vmul.f32 0.03125, %v108_v20  ;;  %v114_v22 = vmul.f32 %v112_v19, %v112_v19 }
 0x176   :  { %v113_v23 = vsub.f32 %v102_v15, %v111_v21  ;;  %v116_v24 = vsel %vm54_vm1, %v114_v22, 0.0 }
 0x177   :  { %117 = vadd.xlane.f32.xlu1 %v116_v24 }
 0x178   :  { %v115_v25 = vmul.f32 %v113_v23, %v113_v23 }
 0x17a   :  { %v119_v26 = vsel %vm54_vm1, %v115_v25, 0.0 }
 0x17b   :  { %120 = vadd.xlane.f32.xlu1 %v119_v26 }
 0x204   :  { %v118_v27 = vpop.xlane.xlu1 %117 }
 0x205   :  { %v122_v28 = vmul.f32 0.03125, %v118_v27 }
 0x207   :  { %v124_v29 = vadd.f32 1e-05, %v122_v28 }
 0x208   :  { %v121_v30 = vpop.xlane.xlu1 %120 }
 0x209   :  { %177 = vrsqrt.f32 %v124_v29  ;;  %v123_v31 = vmul.f32 0.03125, %v121_v30 }
 0x20b   :  { %v125_v32 = vadd.f32 1e-05, %v123_v31 }
 0x20d   :  { %179 = vrsqrt.f32 %v125_v32 }
 0x213   :  { %v178_v33 = vpop.eup %177 }
 0x214   :  { %v128_v35 = vmul.f32 %v178_v33, %v112_v19 }
 0x216   :  { %v137_v37 = vmul.f32 %v159_v34, %v128_v35 }
 0x217   :  { %v180_v38 = vpop.eup %179 }
 0x218   :  { %v146_v39 = vadd.f32 %v160_v36, %v137_v37  ;;  %v129_v40 = vmul.f32 %v180_v38, %v113_v23 }
 0x21a   :  { %148 = vst.msk [vmem:[%s261_s6] sm:$0xff] %vm54_vm1, %v146_v39  ;;  %v138_v41 = vmul.f32 %v159_v34, %v129_v40 }
 0x21c   :  { %v147_v42 = vadd.f32 %v160_v36, %v138_v41 }
 0x21e   :  { %149 = vst.msk [vmem:[%s261_s6 + $0x8] sm:$0xff] %vm54_vm1, %v147_v42 }

// kernel: decoder_forward.17
= control target key start
LH: loop header
LB: loop body
LE: loop exit
PB: predicated region body
PF: predicated region fallthrough
CT: control target
= control target key end

     0   :  { %vm19_vm0 = vcmask 785408   ;;  %v151_v0 = vmov 0.0   ;;  %vm152_vm1 = vmmov 0   ;;  %vm47_vm2 = vcmask 261120   ;;  %s195_s1 = inlined_call_operand.vmem [shape: bf16[32,96], index: 1, kind: input, shape index: {}]   ;;  %s196_s0 = inlined_call_operand.vmem [shape: bf16[16,32], index: 0, kind: input, shape index: {}]   ;;  %s197_s2 = inlined_call_operand.vmem [shape: f32[1,96], index: 2, kind: input, shape index: {}]   ;;  %s198_s3 = inlined_call_operand.vmem [shape: bf16[16,96], index: 3, kind: output, shape index: {}]  }
   0x1   :  { %138 = vmatprep.subr.bf16.mxu0 %v151_v0  ;;  %v148_v1 = vld [vmem:[%s195_s1] sm:$0xff]   ;;  %142 = vmatprep.mubr.msk.bf16.mxu0 %vm152_vm1, %v151_v0  ;;  %20 = vst.msk [vmem:[#allocation2] sm:$0xff] %vm19_vm0, %v151_v0  ;;  %21 = vst.msk [vmem:[#allocation2 + $0x8] sm:$0xff] %vm19_vm0, %v151_v0  ;;  %v149_v2 = vld [vmem:[%s195_s1 + $0x8] sm:$0xff]   ;;  %vm119_vm3 = vcmask 781312  }
   0x2   :  { %139 = vmatpush3.bf16.msra.mxu0 %v148_v1  ;;  %v150_v3 = vld [vmem:[%s196_s0] sm:$0xff]  }
   0x3   :  { %140 = vmatprep.subr.bf16.mxu0 %v151_v0  ;;  %v130_v12 = vld [vmem:[%s197_s2] ss:$0 sm:$0xff] }
   0x6   :  { %141 = vmatpush3.bf16.msra.mxu0 %v149_v2 }
   0x8   :  { %v22_v4 = vld [vmem:[#allocation2] sm:$0xff]  ;;  %v23_v6 = vld [vmem:[#allocation2 + $0x8] sm:$0xff] }
   0x9   :  { %143 = vmatmul.mubr.msk.bf16.vlgmr.msra.gmra.mrb[0].mxu0 %vm47_vm2, %v150_v3 }
  0xdc   :  { %v85_v5 = vpop.f32.mrb[0].mxu0 }
  0xdd   :  { %v92_v7 = vadd.f32 %v85_v5, %v22_v4  ;;  %v144_v8 = vpop.f32.mrb[1].mxu0 }
  0xde   :  { %v88_v9 = vpop.f32.mrb[2].mxu0 }
  0xdf   :  { %95 = vst.msk [vmem:[#allocation2] sm:$0xff] %vm19_vm0, %v92_v7  ;;  %v93_v10 = vadd.f32 %v88_v9, %v23_v6  ;;  %v145_v11 = vpop.f32.mrb[3].mxu0 }
  0xe1   :  { %96 = vst.msk [vmem:[#allocation2 + $0x8] sm:$0xff] %vm19_vm0, %v93_v10 }
  0xe6   :  { %v100_v13 = vld [vmem:[#allocation2] sm:$0xff] }
  0xe7   :  { %v109_v14 = vadd.f32 %v130_v12, %v100_v13 }
  0xe8   :  { %v101_v15 = vld [vmem:[#allocation2 + $0x8] sm:$0xff] }
  0xe9   :  { %v133_v16 = vpack.c.bf16 %v109_v14, %v109_v14  ;;  %v110_v17 = vadd.f32 %v130_v12, %v101_v15 }
  0xeb   :  { %120 = vst.msk [vmem:[%s198_s3] sm:$0xf] %vm119_vm3, %v133_v16  ;;  %v134_v18 = vpack.c.bf16 %v110_v17, %v110_v17 }
  0xed   :  { %121 = vst.msk [vmem:[%s198_s3 + $0x4] sm:$0xf] %vm119_vm3, %v134_v18 }

// kernel: decoder_forward.20
= control target key start
LH: loop header
LB: loop body
LE: loop exit
PB: predicated region body
PF: predicated region fallthrough
CT: control target
= control target key end

     0   :  { %vm19_vm0 = vcmask 261120   ;;  %v150_v0 = vmov 0.0   ;;  %vm151_vm1 = vmmov 0   ;;  %vm118_vm2 = vcmask 257024   ;;  %s195_s1 = inlined_call_operand.vmem [shape: bf16[32,32], index: 1, kind: input, shape index: {}]   ;;  %s196_s0 = inlined_call_operand.vmem [shape: bf16[16,32], index: 0, kind: input, shape index: {}]   ;;  %s197_s2 = inlined_call_operand.vmem [shape: f32[1,32], index: 2, kind: input, shape index: {}]   ;;  %s198_s3 = inlined_call_operand.vmem [shape: bf16[16,32], index: 3, kind: output, shape index: {}]  }
   0x1   :  { %137 = vmatprep.subr.bf16.mxu0 %v150_v0  ;;  %v147_v1 = vld [vmem:[%s195_s1] sm:$0xff]   ;;  %141 = vmatprep.mubr.msk.bf16.mxu0 %vm151_vm1, %v150_v0  ;;  %20 = vst.msk [vmem:[#allocation2] sm:$0xff] %vm19_vm0, %v150_v0  ;;  %21 = vst.msk [vmem:[#allocation2 + $0x8] sm:$0xff] %vm19_vm0, %v150_v0  ;;  %v148_v2 = vld [vmem:[%s195_s1 + $0x8] sm:$0xff]  }
   0x2   :  { %138 = vmatpush3.bf16.msra.mxu0 %v147_v1  ;;  %v149_v3 = vld [vmem:[%s196_s0] sm:$0xff]  }
   0x3   :  { %139 = vmatprep.subr.bf16.mxu0 %v150_v0  ;;  %v129_v12 = vld [vmem:[%s197_s2] ss:$0 sm:$0xff] }
   0x6   :  { %140 = vmatpush3.bf16.msra.mxu0 %v148_v2 }
   0x8   :  { %v22_v4 = vld [vmem:[#allocation2] sm:$0xff]  ;;  %v23_v6 = vld [vmem:[#allocation2 + $0x8] sm:$0xff] }
   0x9   :  { %142 = vmatmul.mubr.msk.bf16.vlgmr.msra.gmra.mrb[0].mxu0 %vm19_vm0, %v149_v3 }
  0xdc   :  { %v85_v5 = vpop.f32.mrb[0].mxu0 }
  0xdd   :  { %v92_v7 = vadd.f32 %v85_v5, %v22_v4  ;;  %v143_v8 = vpop.f32.mrb[1].mxu0 }
  0xde   :  { %v88_v9 = vpop.f32.mrb[2].mxu0 }
  0xdf   :  { %94 = vst.msk [vmem:[#allocation2] sm:$0xff] %vm19_vm0, %v92_v7  ;;  %v93_v10 = vadd.f32 %v88_v9, %v23_v6  ;;  %v144_v11 = vpop.f32.mrb[3].mxu0 }
  0xe1   :  { %95 = vst.msk [vmem:[#allocation2 + $0x8] sm:$0xff] %vm19_vm0, %v93_v10 }
  0xe6   :  { %v99_v13 = vld [vmem:[#allocation2] sm:$0xff] }
  0xe7   :  { %v108_v14 = vadd.f32 %v129_v12, %v99_v13 }
  0xe8   :  { %v100_v15 = vld [vmem:[#allocation2 + $0x8] sm:$0xff] }
  0xe9   :  { %v132_v16 = vpack.c.bf16 %v108_v14, %v108_v14  ;;  %v109_v17 = vadd.f32 %v129_v12, %v100_v15 }
  0xeb   :  { %119 = vst.msk [vmem:[%s198_s3] sm:$0xf] %vm118_vm2, %v132_v16  ;;  %v133_v18 = vpack.c.bf16 %v109_v17, %v109_v17 }
  0xed   :  { %120 = vst.msk [vmem:[%s198_s3 + $0x4] sm:$0xf] %vm118_vm2, %v133_v18 }

// kernel: decoder_forward.18
= control target key start
LH: loop header
LB: loop body
LE: loop exit
PB: predicated region body
PF: predicated region fallthrough
CT: control target
= control target key end

     0   :  { %s944_s15 = smov 0   ;;  %s1048_s0 = inlined_call_operand.vmem [shape: bf16[2,8,32], index: 0, kind: input, shape index: {}]   ;;  %s1049_s1 = inlined_call_operand.vmem [shape: bf16[2,8,32], index: 1, kind: input, shape index: {}]   ;;  %s1050_s2 = inlined_call_operand.vmem [shape: bf16[2,8,32], index: 2, kind: input, shape index: {}]   ;;  %s1051_s3 = inlined_call_operand.vmem [shape: f32[8,8], index: 3, kind: input, shape index: {}]   ;;  %s1052_s4 = inlined_call_operand.vmem [shape: bf16[2,8,32], index: 4, kind: output, shape index: {}]  }
   0x1 LB: > { %s782_s16 = sadd.s32 4294967295, %s909_s15   ;;  %p786_p0 = scmp.ge.s32.totalorder %s909_s15, 1  ;;  %s909_s15 = sphi %s944_s15, %s14_s15  }
   0x2   : > { %p179_p1 = scmp.lt.s32.totalorder %s909_s15, 3 }
   0x4   : > { %p180_p2 = pnand %p786_p0, %p179_p1 }
   0x5   : > { %p211_p3 = scmp.lt.s32.totalorder (!%p180_p2), %s782_s16, 1  ;;  %v911_v0 = vmov (!%p180_p2), 0.0   ;;  %vm912_vm0 = vmmov (!%p180_p2), 0   ;;  %vm232_vm1 = vcmask (!%p180_p2), 64512   ;;  %v976_v5 = vld [vmem:[%s1051_s3] sm:$0xff] (!%p180_p2)  ;;  %s913_s26 = smov (!%p180_p2), 120  }
   0x6   : > { %183 = sbr.rel (%p180_p2) target bundleno = 1481 (0x5c9), region = 36  ;;  %820 = vmatprep.subr.bf16.mxu0 (!%p180_p2), %v911_v0  ;;  %822 = vmatprep.mubr.msk.bf16.mxu0 (!%p180_p2), %vm912_vm0, %v911_v0  ;;  %s914_s27 = smov (!%p180_p2), 112   ;;  %vm296_vm2 = vcmask (!%p180_p2), 1043456   ;;  %vm698_vm3 = vcmask (!%p180_p2), 130048   ;;  %vm700_vm4 = vcmask (!%p180_p2), 195584   ;;  %vm703_vm5 = vcmask (!%p180_p2), 257024  }
   0x7   : > { %826 = vmatprep.subr.bf16.mxu1 (!%p180_p2), %v911_v0  ;;  %828 = vmatprep.mubr.msk.bf16.mxu1 (!%p180_p2), %vm912_vm0, %v911_v0  ;;  %s915_s28 = smov (!%p180_p2), 104   ;;  %s916_s6 = smov (!%p180_p2), 8  }
   0x8   : > { %s917_s7 = smov (!%p180_p2), 16   ;;  %s918_s8 = smov (!%p180_p2), 24  }
   0xd   : > { %s1054_s16 = smov (!%p211_p3, %s782_s16), 1 }
   0xe   : > { %s958_s17 = sshll.u32 %s1054_s16, 2 }
   0xf   : > { %s218_s20 = scalar_lea.vmem %s1049_s1, %s958_s17  ;;  %s214_s23 = scalar_lea.vmem %s1048_s0, %s958_s17 }
  0x10   : > { %v229_v1 = vld [vmem:[%s218_s20] sm:$0xf]  ;;  %s222_s5 = scalar_lea.vmem %s1050_s2, %s958_s17  ;;  %s226_s11 = scalar_lea.vmem %s1052_s4, %s958_s17 }
  0x11   : > { %v237_v2 = vsel %vm232_vm1, %v229_v1, 0  ;;  %v228_v3 = vld [vmem:[%s214_s23] sm:$0xf]  ;;  %v794_v12 = vcombine.low %v229_v1, %v229_v1 }
  0x12   : > { %821 = vmatpush3.bf16.xpose.msra.mxu0 %v237_v2  ;;  %v793_v13 = vcombine.low %v228_v3, %v228_v3  ;;  %v990_v19 = vld [vmem:[%s222_s5] sm:$0xf] }
  0x13   : > { %838 = vmatprep.subr.bf16.mxu0 %v911_v0  ;;  %348 = vrot.lane.b32.xlu1 %v794_v12, %s913_s26  ;;  %v298_v20 = vsel %vm296_vm2, %v990_v19, 0 }
  0x14   : > { %827 = vmatpush3.bf16.msra.mxu1 %v298_v20 }
  0x15   : > { %832 = vmatprep.subr.bf16.mxu1 %v911_v0 }
  0x17   : > { %343 = vrot.lane.b32.xlu1 %v793_v13, %s913_s26 }
  0x19   : > { %823 = vmatmul.mubr.msk.bf16.vlgmr.msra.gmra.mrb[0].mxu0 %vm232_vm1, %v228_v3 }
  0x1a   : > { %840 = vmatprep.mubr.msk.bf16.mxu0 %vm912_vm0, %v911_v0 }
  0x1b   : > { %461 = vrot.lane.b32.xlu1 %v793_v13, %s914_s27 }
  0x1f   : > { %575 = vrot.lane.b32.xlu1 %v794_v12, %s915_s28 }
  0x23   : > { %573 = vrot.lane.b32.xlu1 %v793_v13, %s915_s28 }
  0x85   : > { %v349_v23 = vpop.permute.xlu1 %348 }
  0x86   : > { %v354_v25 = vsel %vm232_vm1, %v349_v23, 0 }
  0x89   : > { %v344_v27 = vpop.permute.xlu1 %343 }
  0x8d   : > { %v462_v29 = vpop.permute.xlu1 %461 }
  0x91   : > { %v576_v31 = vpop.permute.xlu1 %575 }
  0x92   : > { %v581_v32 = vsel %vm232_vm1, %v576_v31, 0 }
  0x95   : > { %v574_v33 = vpop.permute.xlu1 %573 }
  0xec   : > { %v273_v4 = vpop.f32.mrb[0].mxu0 }
  0xed   : > { %v279_v6 = vmul.f32 0.35355338, %v273_v4  ;;  %v824_v7 = vpop.f32.mrb[1].mxu0 }
  0xee   : > { %v276_v8 = vpop.f32.mrb[2].mxu0 }
  0xef   : > { %v825_v9 = vpop.f32.mrb[3].mxu0  ;;  %v280_v10 = vadd.f32 %v279_v6, %v976_v5 }
  0xf1   : > { %v281_v11 = vsel %vm232_vm1, %v280_v10, -inf }
  0xf2   : > { %282 = vmax.xlane.f32.xlu0 %v281_v11 }
 0x17f   : > { %v283_v14 = vpop.xlane.xlu0 %282 }
 0x180   : > { %v284_v15 = vsub.f32 %v280_v10, %v283_v14 }
 0x182   : > { %v285_v16 = vmul.f32 1.442695, %v284_v15 }
 0x184   : > { %887 = vpow2.f32 %v285_v16 }
 0x18e   : > { %v888_v17 = vpop.eup %887 }
 0x18f   : > { %v287_v18 = vsel %vm232_vm1, %v888_v17, 0.0 }
 0x190   : > { %288 = vadd.xlane.f32.xlu0 %v287_v18 }
 0x1a6   : > { %463 = vrot.lane.b32.xlu0 %v794_v12, %s914_s27 }
 0x21d   : > { %v289_v21 = vpop.xlane.xlu0 %288 }
 0x21e   : > { %889 = vrcp.f32 %v289_v21 }
 0x221   : > { %v464_v28 = vpop.permute.xlu0 %463 }
 0x222   : > { %v469_v30 = vsel %vm232_vm1, %v464_v28, 0 }
 0x228   : > { %v890_v22 = vpop.eup %889 }
 0x229   : > { %v291_v24 = vmul.f32 %v890_v22, %v888_v17 }
 0x22b   : > { %v292_v26 = vpack.c.bf16 %v291_v24, %v291_v24 }
 0x22d   : > { %829 = vmatmul.mubr.msk.bf16.vlgmr.msra.gmra.mrb[0].mxu1 %vm232_vm1, %v292_v26 }
 0x22e   : > { %833 = vmatpush3.bf16.xpose.msra.mxu1 %v354_v25  ;;  %834 = vmatprep.mubr.msk.bf16.mxu1 %vm912_vm0, %v911_v0 }
 0x22f   : > { %844 = vmatprep.subr.bf16.mxu1 %v911_v0 }
 0x235   : > { %835 = vmatmul.mubr.msk.bf16.vlgmr.msra.gmra.mrb[4].mxu1 %vm232_vm1, %v344_v27 }
 0x236   : > { %845 = vmatpush3.bf16.xpose.msra.mxu1 %v469_v30  ;;  %846 = vmatprep.mubr.msk.bf16.mxu1 %vm912_vm0, %v911_v0 }
 0x237   : > { %856 = vmatprep.subr.bf16.mxu1 %v911_v0 }
 0x23d   : > { %847 = vmatmul.mubr.msk.bf16.vlgmr.msra.gmra.mrb[8].mxu1 %vm232_vm1, %v462_v29 }
 0x23e   : > { %857 = vmatpush3.bf16.xpose.msra.mxu1 %v581_v32  ;;  %858 = vmatprep.mubr.msk.bf16.mxu1 %vm912_vm0, %v911_v0 }
 0x245   : > { %859 = vmatmul.mubr.msk.bf16.vlgmr.msra.gmra.mrb[12].mxu1 %vm232_vm1, %v574_v33 }
 0x300   : > { %v1011_v34 = vpop.f32.mrb[0].mxu1 }
 0x301   : > { %v830_v35 = vpop.f32.mrb[1].mxu1 }
 0x302   : > { %v337_v36 = vpop.f32.mrb[2].mxu1 }
 0x303   : > { %v831_v37 = vpop.f32.mrb[3].mxu1 }
 0x308   : > { %v390_v38 = vpop.f32.mrb[4].mxu1 }
 0x309   : > { %v396_v39 = vmul.f32 0.35355338, %v390_v38  ;;  %v836_v40 = vpop.f32.mrb[5].mxu1 }
 0x30a   : > { %v393_v41 = vpop.f32.mrb[6].mxu1 }
 0x30b   : > { %v837_v42 = vpop.f32.mrb[7].mxu1  ;;  %v397_v43 = vadd.f32 %v396_v39, %v976_v5 }
 0x30d   : > { %v398_v44 = vsel %vm232_vm1, %v397_v43, -inf }
 0x30e   : > { %399 = vmax.xlane.f32.xlu1 %v398_v44 }
 0x310   : > { %v505_v45 = vpop.f32.mrb[8].mxu1 }
 0x311   : > { %v511_v46 = vmul.f32 0.35355338, %v505_v45  ;;  %v848_v47 = vpop.f32.mrb[9].mxu1 }
 0x312   : > { %v508_v48 = vpop.f32.mrb[10].mxu1 }
 0x313   : > { %v512_v49 = vadd.f32 %v511_v46, %v976_v5  ;;  %v849_v50 = vpop.f32.mrb[11].mxu1 }
 0x315   : > { %v513_v51 = vsel %vm232_vm1, %v512_v49, -inf }
 0x316   : > { %514 = vmax.xlane.f32.xlu0 %v513_v51 }
 0x318   : > { %v617_v52 = vpop.f32.mrb[12].mxu1 }
 0x319   : > { %v623_v53 = vmul.f32 0.35355338, %v617_v52  ;;  %v860_v54 = vpop.f32.mrb[13].mxu1 }
 0x31a   : > { %v620_v55 = vpop.f32.mrb[14].mxu1 }
 0x31b   : > { %v624_v56 = vadd.f32 %v623_v53, %v976_v5  ;;  %v861_v57 = vpop.f32.mrb[15].mxu1  ;;  %v796_v5 = vcombine.low %v990_v19, %v990_v19 }
 0x31d   : > { %v625_v58 = vsel %vm232_vm1, %v624_v56, -inf }
 0x31e   : > { %626 = vmax.xlane.f32.xlu1 %v625_v58 }
 0x39b   : > { %v400_v59 = vpop.xlane.xlu1 %399 }
 0x39c   : > { %v401_v60 = vsub.f32 %v397_v43, %v400_v59 }
 0x39e   : > { %v402_v61 = vmul.f32 1.442695, %v401_v60 }
 0x3a0   : > { %891 = vpow2.f32 %v402_v61 }
 0x3a3   : > { %v515_v62 = vpop.xlane.xlu0 %514 }
 0x3a4   : > { %v516_v63 = vsub.f32 %v512_v49, %v515_v62 }
 0x3a6   : > { %v517_v1 = vmul.f32 1.442695, %v516_v63 }
 0x3a8   : > { %893 = vpow2.f32 %v517_v1 }
 0x3aa   : > { %v892_v2 = vpop.eup %891 }
 0x3ab   : > { %v404_v3 = vsel %vm232_vm1, %v892_v2, 0.0  ;;  %v627_v7 = vpop.xlane.xlu1 %626 }
 0x3ac   : > { %405 = vadd.xlane.f32.xlu1 %v404_v3  ;;  %v628_v8 = vsub.f32 %v624_v56, %v627_v7 }
 0x3ae   : > { %v629_v9 = vmul.f32 1.442695, %v628_v8 }
 0x3b0   : > { %895 = vpow2.f32 %v629_v9 }
 0x3b2   : > { %v894_v4 = vpop.eup %893 }
 0x3b3   : > { %v519_v6 = vsel %vm232_vm1, %v894_v4, 0.0 }
 0x3b4   : > { %520 = vadd.xlane.f32.xlu0 %v519_v6 }
 0x3ba   : > { %v896_v10 = vpop.eup %895 }
 0x3bb   : > { %v631_v11 = vsel %vm232_vm1, %v896_v10, 0.0 }
 0x3bd   : > { %525 = vrot.lane.b32.xlu1 %v796_v5, %s914_s27 }
 0x3ca   : > { %413 = vrot.lane.b32.xlu0 %v796_v5, %s913_s26 }
 0x3e1   : > { %632 = vadd.xlane.f32.xlu1 %v631_v11 }
 0x3f2   : > { %637 = vrot.lane.b32.xlu1 %v796_v5, %s915_s28 }
 0x439   : > { %v406_v12 = vpop.xlane.xlu1 %405 }
 0x43a   : > { %897 = vrcp.f32 %v406_v12 }
 0x43d   : > { %v526_v18 = vpop.permute.xlu1 %525 }
 0x43e   : > { %v531_v20 = vsel %vm296_vm2, %v526_v18, 0 }
 0x441   : > { %v521_v13 = vpop.xlane.xlu0 %520 }
 0x442   : > { %899 = vrcp.f32 %v521_v13 }
 0x444   : > { %v898_v14 = vpop.eup %897 }
 0x445   : > { %v408_v15 = vmul.f32 %v898_v14, %v892_v2  ;;  %v414_v16 = vpop.permute.xlu0 %413 }
 0x446   : > { %v419_v17 = vsel %vm296_vm2, %v414_v16, 0 }
 0x447   : > { %839 = vmatpush3.bf16.msra.mxu0 %v419_v17  ;;  %v409_v19 = vpack.c.bf16 %v408_v15, %v408_v15 }
 0x448   : > { %850 = vmatprep.subr.bf16.mxu0 %v911_v0 }
 0x44a   : > { %841 = vmatmul.mubr.msk.bf16.vlgmr.msra.gmra.mrb[4].mxu0 %vm232_vm1, %v409_v19 }
 0x44b   : > { %851 = vmatpush3.bf16.msra.mxu0 %v531_v20  ;;  %852 = vmatprep.mubr.msk.bf16.mxu0 %vm912_vm0, %v911_v0 }
 0x44c   : > { %v900_v21 = vpop.eup %899  ;;  %862 = vmatprep.subr.bf16.mxu0 %v911_v0 }
 0x44d   : > { %v523_v22 = vmul.f32 %v900_v21, %v894_v4 }
 0x44f   : > { %v524_v23 = vpack.c.bf16 %v523_v22, %v523_v22 }
 0x452   : > { %853 = vmatmul.mubr.msk.bf16.vlgmr.msra.gmra.mrb[8].mxu0 %vm232_vm1, %v524_v23 }
 0x453   : > { %864 = vmatprep.mubr.msk.bf16.mxu0 %vm912_vm0, %v911_v0 }
 0x46e   : > { %v633_v24 = vpop.xlane.xlu1 %632 }
 0x46f   : > { %901 = vrcp.f32 %v633_v24 }
 0x472   : > { %v638_v25 = vpop.permute.xlu1 %637 }
 0x473   : > { %v643_v26 = vsel %vm296_vm2, %v638_v25, 0 }
 0x474   : > { %863 = vmatpush3.bf16.msra.mxu0 %v643_v26 }
 0x479   : > { %v902_v27 = vpop.eup %901 }
 0x47a   : > { %v635_v28 = vmul.f32 %v902_v27, %v896_v10 }
 0x47c   : > { %v636_v29 = vpack.c.bf16 %v635_v28, %v635_v28 }
 0x47e   : > { %865 = vmatmul.mubr.msk.bf16.vlgmr.msra.gmra.mrb[12].mxu0 %vm232_vm1, %v636_v29 }
 0x51d   : > { %v455_v30 = vpop.f32.mrb[4].mxu0 }
 0x51e   : > { %686 = vrot.lane.b32.xlu0 %v455_v30, %s916_s6  ;;  %v842_v31 = vpop.f32.mrb[5].mxu0 }
 0x51f   : > { %v458_v32 = vpop.f32.mrb[6].mxu0 }
 0x520   : > { %v843_v33 = vpop.f32.mrb[7].mxu0 }
 0x525   : > { %v567_v35 = vpop.f32.mrb[8].mxu0 }
 0x526   : > { %690 = vrot.lane.b32.xlu1 %v567_v35, %s917_s7  ;;  %v854_v0 = vpop.f32.mrb[9].mxu0 }
 0x527   : > { %v570_v36 = vpop.f32.mrb[10].mxu0 }
 0x528   : > { %v855_v37 = vpop.f32.mrb[11].mxu0 }
 0x551   : > { %v679_v38 = vpop.f32.mrb[12].mxu0 }
 0x552   : > { %694 = vrot.lane.b32.xlu0 %v679_v38, %s918_s8  ;;  %v866_v39 = vpop.f32.mrb[13].mxu0 }
 0x553   : > { %v682_v40 = vpop.f32.mrb[14].mxu0 }
 0x554   : > { %v867_v41 = vpop.f32.mrb[15].mxu0 }
 0x590   : > { %v687_v42 = vpop.permute.xlu0 %686 }
 0x591   : > { %v697_v44 = vsel %vm232_vm1, %v1011_v34, %v687_v42 }
 0x598   : > { %v691_v43 = vpop.permute.xlu1 %690 }
 0x599   : > { %v699_v45 = vsel %vm698_vm3, %v697_v44, %v691_v43 }
 0x5c4   : > { %v695_v46 = vpop.permute.xlu0 %694 }
 0x5c5   : > { %v701_v47 = vsel %vm700_vm4, %v699_v45, %v695_v46 }
 0x5c6   : > { %v702_v48 = vpack.c.bf16 %v701_v47, %v701_v47 }
 0x5c8   : > { %704 = vst.msk [vmem:[%s226_s11] sm:$0xf] %vm703_vm5, %v702_v48 }
 0x5c9 PF: > { %s14_s15 = sadd.s32 1, %s909_s15  }
 0x5ca   : > { %p11_p4 = scmp.ge.s32.totalorder %s14_s15, 4  }
 0x5cc   :  { %13 = sbr.rel (!%p11_p4) target bundleno = 1 (0x1), region = 72 }

// kernel: decoder_forward.21
= control target key start
LH: loop header
LB: loop body
LE: loop exit
PB: predicated region body
PF: predicated region fallthrough
CT: control target
= control target key end

     0   :  { %vm19_vm0 = vcmask 523264   ;;  %v151_v0 = vmov 0.0   ;;  %vm152_vm1 = vmmov 0   ;;  %vm47_vm2 = vcmask 261120   ;;  %s195_s1 = inlined_call_operand.vmem [shape: bf16[32,64], index: 1, kind: input, shape index: {}]   ;;  %s196_s0 = inlined_call_operand.vmem [shape: bf16[16,32], index: 0, kind: input, shape index: {}]   ;;  %s197_s2 = inlined_call_operand.vmem [shape: f32[1,64], index: 2, kind: input, shape index: {}]   ;;  %s198_s3 = inlined_call_operand.vmem [shape: bf16[16,64], index: 3, kind: output, shape index: {}]  }
   0x1   :  { %138 = vmatprep.subr.bf16.mxu0 %v151_v0  ;;  %v148_v1 = vld [vmem:[%s195_s1] sm:$0xff]   ;;  %142 = vmatprep.mubr.msk.bf16.mxu0 %vm152_vm1, %v151_v0  ;;  %20 = vst.msk [vmem:[#allocation2] sm:$0xff] %vm19_vm0, %v151_v0  ;;  %21 = vst.msk [vmem:[#allocation2 + $0x8] sm:$0xff] %vm19_vm0, %v151_v0  ;;  %v149_v2 = vld [vmem:[%s195_s1 + $0x8] sm:$0xff]   ;;  %vm119_vm3 = vcmask 519168  }
   0x2   :  { %139 = vmatpush3.bf16.msra.mxu0 %v148_v1  ;;  %v150_v3 = vld [vmem:[%s196_s0] sm:$0xff]  }
   0x3   :  { %140 = vmatprep.subr.bf16.mxu0 %v151_v0  ;;  %v130_v12 = vld [vmem:[%s197_s2] ss:$0 sm:$0xff] }
   0x6   :  { %141 = vmatpush3.bf16.msra.mxu0 %v149_v2 }
   0x8   :  { %v22_v4 = vld [vmem:[#allocation2] sm:$0xff]  ;;  %v23_v6 = vld [vmem:[#allocation2 + $0x8] sm:$0xff] }
   0x9   :  { %143 = vmatmul.mubr.msk.bf16.vlgmr.msra.gmra.mrb[0].mxu0 %vm47_vm2, %v150_v3 }
  0xdc   :  { %v85_v5 = vpop.f32.mrb[0].mxu0 }
  0xdd   :  { %v92_v7 = vadd.f32 %v85_v5, %v22_v4  ;;  %v144_v8 = vpop.f32.mrb[1].mxu0 }
  0xde   :  { %v88_v9 = vpop.f32.mrb[2].mxu0 }
  0xdf   :  { %95 = vst.msk [vmem:[#allocation2] sm:$0xff] %vm19_vm0, %v92_v7  ;;  %v93_v10 = vadd.f32 %v88_v9, %v23_v6  ;;  %v145_v11 = vpop.f32.mrb[3].mxu0 }
  0xe1   :  { %96 = vst.msk [vmem:[#allocation2 + $0x8] sm:$0xff] %vm19_vm0, %v93_v10 }
  0xe6   :  { %v100_v13 = vld [vmem:[#allocation2] sm:$0xff] }
  0xe7   :  { %v109_v14 = vadd.f32 %v130_v12, %v100_v13 }
  0xe8   :  { %v101_v15 = vld [vmem:[#allocation2 + $0x8] sm:$0xff] }
  0xe9   :  { %v133_v16 = vpack.c.bf16 %v109_v14, %v109_v14  ;;  %v110_v17 = vadd.f32 %v130_v12, %v101_v15 }
  0xeb   :  { %120 = vst.msk [vmem:[%s198_s3] sm:$0xf] %vm119_vm3, %v133_v16  ;;  %v134_v18 = vpack.c.bf16 %v110_v17, %v110_v17 }
  0xed   :  { %121 = vst.msk [vmem:[%s198_s3 + $0x4] sm:$0xf] %vm119_vm3, %v134_v18 }

// kernel: decoder_forward.24
= control target key start
LH: loop header
LB: loop body
LE: loop exit
PB: predicated region body
PF: predicated region fallthrough
CT: control target
= control target key end

     0   :  { %v301_v0 = vmov 0.0   ;;  %vm302_vm0 = vmmov 0   ;;  %vm60_vm1 = vcmask 261120   ;;  %vm147_vm2 = vcmask 523264   ;;  %s400_s1 = inlined_call_operand.vmem [shape: bf16[32,64], index: 1, kind: input, shape index: {}]   ;;  %s401_s3 = inlined_call_operand.vmem [shape: bf16[64,32], index: 3, kind: input, shape index: {}]   ;;  %s402_s0 = inlined_call_operand.vmem [shape: bf16[16,32], index: 0, kind: input, shape index: {}]   ;;  %s403_s2 = inlined_call_operand.vmem [shape: f32[1,64], index: 2, kind: input, shape index: {}]   ;;  %s404_s4 = inlined_call_operand.vmem [shape: f32[1,32], index: 4, kind: input, shape index: {}]   ;;  %s405_s5 = inlined_call_operand.vmem [shape: f32[16,32], index: 5, kind: input, shape index: {}]   ;;  %s406_s6 = inlined_call_operand.vmem [shape: f32[1,32], index: 6, kind: input, shape index: {}]   ;;  %s407_s7 = inlined_call_operand.vmem [shape: f32[1,32], index: 7, kind: input, shape index: {}]   ;;  %s408_s8 = inlined_call_operand.vmem [shape: f32[16,32], index: 8, kind: output, shape index: {}]  }
   0x1   :  { %268 = vmatprep.subr.bf16.mxu0 %v301_v0  ;;  %v290_v1 = vld [vmem:[%s400_s1] sm:$0xff]   ;;  %272 = vmatprep.mubr.msk.bf16.mxu0 %vm302_vm0, %v301_v0  ;;  %v291_v2 = vld [vmem:[%s400_s1 + $0x8] sm:$0xff]   ;;  %v295_v6 = vld [vmem:[%s401_s3 + $0x10] sm:$0xff]  }
   0x2   :  { %276 = vmatprep.subr.bf16.mxu1 %v301_v0  ;;  %284 = vmatprep.mubr.msk.bf16.mxu1 %vm302_vm0, %v301_v0  ;;  %v293_v3 = vld [vmem:[%s401_s3] sm:$0xff]   ;;  %v294_v5 = vld [vmem:[%s401_s3 + $0x8] sm:$0xff]   ;;  %v296_v7 = vld [vmem:[%s401_s3 + $0x18] sm:$0xff]  }
   0x3   :  { %269 = vmatpush3.bf16.msra.mxu0 %v290_v1  ;;  %v292_v4 = vld [vmem:[%s402_s0] sm:$0xff]   ;;  %277 = vmatpush3.bf16.msra.mxu1 %v293_v3  ;;  %v193_v24 = vld [vmem:[%s405_s5 + $0x8] sm:$0xff] }
   0x4   :  { %270 = vmatprep.subr.bf16.mxu0 %v301_v0  ;;  %278 = vmatprep.subr.bf16.mxu1 %v301_v0  ;;  %v247_v8 = vld [vmem:[%s403_s2] ss:$0 sm:$0xff] }
   0x5   :  { %v252_v18 = vld [vmem:[%s404_s4] ss:$0 sm:$0xff] }
   0x6   :  { %v192_v20 = vld [vmem:[%s405_s5] sm:$0xff] }
   0x7   :  { %271 = vmatpush3.bf16.msra.mxu0 %v291_v2  ;;  %279 = vmatpush3.bf16.msra.mxu1 %v294_v5  ;;  %v258_v48 = vld [vmem:[%s406_s6] ss:$0 sm:$0xff] }
   0x8   :  { %280 = vmatprep.subr.bf16.mxu1 %v301_v0  ;;  %v259_v50 = vld [vmem:[%s407_s7] ss:$0 sm:$0xff] }
   0xa   :  { %273 = vmatmul.mubr.msk.bf16.vlgmr.msra.gmra.mrb[0].mxu0 %vm60_vm1, %v292_v4 }
   0xb   :  { %281 = vmatpush3.bf16.msra.mxu1 %v295_v6 }
   0xc   :  { %282 = vmatprep.subr.bf16.mxu1 %v301_v0 }
   0xf   :  { %283 = vmatpush3.bf16.msra.mxu1 %v296_v7 }
  0xdd   :  { %v98_v9 = vpop.f32.mrb[0].mxu0 }
  0xde   :  { %v99_v10 = vadd.f32 %v247_v8, %v98_v9  ;;  %v274_v11 = vpop.f32.mrb[1].mxu0 }
  0xdf   :  { %v101_v12 = vpop.f32.mrb[2].mxu0 }
  0xe0   :  { %v102_v13 = vadd.f32 %v247_v8, %v101_v12  ;;  %v275_v14 = vpop.f32.mrb[3].mxu0  ;;  %v105_v15 = vmax.f32 %v99_v10, 0.0 }
  0xe2   :  { %v106_v16 = vmax.f32 %v102_v13, 0.0 }
  0xe4   :  { %v107_v17 = vpack.c.bf16 %v106_v16, %v105_v15 }
  0xe6   :  { %285 = vmatmul.mubr.msk.bf16.vlgmr.msra.gmra.mrb[0].mxu1 %vm147_vm2, %v107_v17 }
 0x1b9   :  { %v185_v19 = vpop.f32.mrb[0].mxu1 }
 0x1ba   :  { %v186_v21 = vadd.f32 %v252_v18, %v185_v19  ;;  %v286_v22 = vpop.f32.mrb[1].mxu1 }
 0x1bb   :  { %v188_v23 = vpop.f32.mrb[2].mxu1 }
 0x1bc   :  { %v189_v25 = vadd.f32 %v252_v18, %v188_v23  ;;  %v287_v26 = vpop.f32.mrb[3].mxu1  ;;  %v194_v27 = vadd.f32 %v192_v20, %v186_v21 }
 0x1be   :  { %v196_v28 = vsel %vm60_vm1, %v194_v27, 0.0  ;;  %v195_v29 = vadd.f32 %v193_v24, %v189_v25 }
 0x1bf   :  { %197 = vadd.xlane.f32.xlu0 %v196_v28 }
 0x1c0   :  { %v199_v30 = vsel %vm60_vm1, %v195_v29, 0.0 }
 0x1c3   :  { %200 = vadd.xlane.f32.xlu0 %v199_v30 }
 0x24c   :  { %v198_v31 = vpop.xlane.xlu0 %197 }
 0x24d   :  { %v203_v32 = vmul.f32 0.03125, %v198_v31 }
 0x24f   :  { %v205_v33 = vsub.f32 %v194_v27, %v203_v32 }
 0x250   :  { %v201_v34 = vpop.xlane.xlu0 %200 }
 0x251   :  { %v204_v35 = vmul.f32 0.03125, %v201_v34  ;;  %v207_v36 = vmul.f32 %v205_v33, %v205_v33 }
 0x253   :  { %v206_v37 = vsub.f32 %v195_v29, %v204_v35  ;;  %v209_v38 = vsel %vm60_vm1, %v207_v36, 0.0 }
 0x254   :  { %210 = vadd.xlane.f32.xlu1 %v209_v38 }
 0x255   :  { %v208_v39 = vmul.f32 %v206_v37, %v206_v37 }
 0x257   :  { %v212_v40 = vsel %vm60_vm1, %v208_v39, 0.0 }
 0x258   :  { %213 = vadd.xlane.f32.xlu1 %v212_v40 }
 0x2e1   :  { %v211_v41 = vpop.xlane.xlu1 %210 }
 0x2e2   :  { %v215_v42 = vmul.f32 0.03125, %v211_v41 }
 0x2e4   :  { %v217_v43 = vadd.f32 1e-05, %v215_v42 }
 0x2e5   :  { %v214_v44 = vpop.xlane.xlu1 %213 }
 0x2e6   :  { %297 = vrsqrt.f32 %v217_v43  ;;  %v216_v45 = vmul.f32 0.03125, %v214_v44 }
 0x2e8   :  { %v218_v46 = vadd.f32 1e-05, %v216_v45 }
 0x2ea   :  { %299 = vrsqrt.f32 %v218_v46 }
 0x2f0   :  { %v298_v47 = vpop.eup %297 }
 0x2f1   :  { %v221_v49 = vmul.f32 %v298_v47, %v205_v33 }
 0x2f3   :  { %v230_v51 = vmul.f32 %v258_v48, %v221_v49 }
 0x2f4   :  { %v300_v52 = vpop.eup %299 }
 0x2f5   :  { %v239_v53 = vadd.f32 %v259_v50, %v230_v51  ;;  %v222_v54 = vmul.f32 %v300_v52, %v206_v37 }
 0x2f7   :  { %241 = vst.msk [vmem:[%s408_s8] sm:$0xff] %vm60_vm1, %v239_v53  ;;  %v231_v55 = vmul.f32 %v258_v48, %v222_v54 }
 0x2f9   :  { %v240_v56 = vadd.f32 %v259_v50, %v231_v55 }
 0x2fb   :  { %242 = vst.msk [vmem:[%s408_s8 + $0x8] sm:$0xff] %vm60_vm1, %v240_v56 }

// kernel: decoder_forward.33
= control target key start
LH: loop header
LB: loop body
LE: loop exit
PB: predicated region body
PF: predicated region fallthrough
CT: control target
= control target key end

     0   :  { %v178_v1 = vmov 0.0   ;;  %vm179_vm0 = vmmov 0   ;;  %vm20_vm1 = vcmask 523264   ;;  %s233_s0 = inlined_call_operand.vmem [shape: bf16[16,32], index: 0, kind: input, shape index: {}]   ;;  %s234_s1 = inlined_call_operand.vmem [shape: bf16[32,64], index: 1, kind: input, shape index: {}]   ;;  %s235_s2 = inlined_call_operand.vmem [shape: f32[1,64], index: 2, kind: input, shape index: {}]   ;;  %s236_s3 = inlined_call_operand.hbm [shape: f32[16,64], index: 3, kind: output, shape index: {}]  }
   0x1   :  { %v151_v0 = vld [vmem:[%s234_s1] sm:$0xff]   ;;  %138 = vmatprep.subr.bf16.mxu0 %v178_v1  ;;  %v152_v2 = vld [vmem:[%s234_s1 + $0x8] sm:$0xff]   ;;  %142 = vmatprep.mubr.msk.bf16.mxu0 %vm179_vm0, %v178_v1 }
   0x2   :  { %139 = vmatpush3.bf16.msra.mxu0 %v151_v0 }
   0x3   :  { %140 = vmatprep.subr.bf16.mxu0 %v178_v1 }
   0x4   :  { %8 = vsyncpa [#allocation4], 0  ;;  %21 = vst.msk [vmem:[#allocation2] sm:$0xff] %vm20_vm1, %v178_v1  ;;  %v153_v3 = vld [vmem:[%s233_s0] sm:$0xff]   ;;  %vm48_vm2 = vcmask 261120   ;;  %s180_s0 = smov [#allocation3]  }
   0x5   :  { %22 = vst.msk [vmem:[#allocation2 + $0x8] sm:$0xff] %vm20_vm1, %v178_v1  ;;  %v134_v12 = vld [vmem:[%s235_s2] ss:$0 sm:$0xff]  ;;  %s119_s19 = sshll.u32 %s180_s0, 4  ;;  %s120_s19 = int_to_ptr.vmem [resolvable:$true] %s119_s19 }
   0x6   :  { %141 = vmatpush3.bf16.msra.mxu0 %v152_v2  ;;  %s154_s20 = scalar_lea.vmem %s120_s19, 256  ;;  %p159_p1 = scmp.lt.s32.totalorder %s120_s19, %s120_s19 }
   0x7   :  { %p155_p0 = scmp.ne.s32.totalorder %s120_s19, %s154_s20  ;;  %p160_p2 = scmp.lt.s32.totalorder %s154_s20, %s154_s20 }
   0x9   :  { %143 = vmatmul.mubr.msk.bf16.vlgmr.msra.gmra.mrb[0].mxu0 %vm48_vm2, %v153_v3  ;;  %p161_p3 = por %p160_p2, %p159_p1 }
   0xb   :  { %v23_v4 = vld [vmem:[#allocation2] sm:$0xff]  ;;  %p162_p4 = pnand %p161_p3, %p155_p0 }
   0xc   :  { %v24_v6 = vld [vmem:[#allocation2 + $0x8] sm:$0xff] }
  0xdc   :  { %v86_v5 = vpop.f32.mrb[0].mxu0 }
  0xdd   :  { %v93_v7 = vadd.f32 %v86_v5, %v23_v4  ;;  %v144_v8 = vpop.f32.mrb[1].mxu0 }
  0xde   :  { %v89_v9 = vpop.f32.mrb[2].mxu0 }
  0xdf   :  { %96 = vst.msk [vmem:[#allocation2] sm:$0xff] %vm20_vm1, %v93_v7  ;;  %v94_v10 = vadd.f32 %v89_v9, %v24_v6  ;;  %v145_v11 = vpop.f32.mrb[3].mxu0 }
  0xe1   :  { %97 = vst.msk [vmem:[#allocation2 + $0x8] sm:$0xff] %vm20_vm1, %v94_v10 }
  0xe6   :  { %v101_v13 = vld [vmem:[#allocation2] sm:$0xff] }
  0xe7   :  { %v110_v14 = vadd.f32 %v134_v12, %v101_v13 }
  0xe8   :  { %v102_v15 = vld [vmem:[#allocation2 + $0x8] sm:$0xff] }
  0xe9   :  { %v111_v16 = vadd.f32 %v134_v12, %v102_v15  ;;  %112 = vst.msk [vmem:[#allocation3] sm:$0xff] %vm20_vm1, %v110_v14 }
  0xeb   :  { %113 = vst.msk [vmem:[#allocation3 + $0x8] sm:$0xff] %vm20_vm1, %v111_v16 }
  0xec   :  { %165 = shalt.err (!%p162_p4)
}
  0xed   :  { %s166_s22 = scalar_lea.hbm %s236_s3, 256 }
  0xee   :  { %p167_p5 = scmp.ne.s32.totalorder %s236_s3, %s166_s22  ;;  %p170_p6 = scmp.lt.u32.totalorder %s166_s22, %s236_s3 }
  0xf0   :  { %p172_p7 = pnand %p170_p6, %p167_p5 }
  0xf2   :  { %175 = shalt.err (!%p172_p7)
}
  0xf3   :  { %s181_s27 = smov 128   ;;  %s182_s28 = smov 8  }
  0xf4   :  { %125 = dma.vmem_to_hbm [thread:$0]  %s120_s19, 256, %s236_s3, [#allocation4], %s181_s27, %s181_s27, %s182_s28  }
  0xf5   :  { %176 = dma.done.wait [#allocation4], 256  }
  0xf6   :  { %177 = vsyncadd [#allocation4], 4294967040 }
  0xf7   :  { %129 = vsyncpa [#allocation4], 1 }

</bundles_post_ra>
